<compile_context>
chip_gen: v5e
topology: v5e:2x2
jax: 0.10.0
libtpu: 0.0.40
codegen_flags: <defaults>
</compile_context>

<pallas_src>
import jax
import jax.numpy as jnp
import numpy as np
from jax.experimental import pallas as pl
from jax.experimental.pallas import tpu as pltpu


def _tap_mask(H, W):
    """(9, H*W) float32 validity mask per 3x3 tap, tap order (dy, dx)."""
    yy, xx = np.meshgrid(np.arange(H), np.arange(W), indexing="ij")
    rows = []
    for dy in range(3):
        for dx in range(3):
            oy, ox = dy - 1, dx - 1
            valid = ((yy + oy >= 0) & (yy + oy < H) &
                     (xx + ox >= 0) & (xx + ox < W))
            rows.append(valid.reshape(-1))
    return jnp.asarray(np.stack(rows, axis=0), dtype=jnp.float32)


def _pack_weights(wA, wB, bA, bB, cin, cout, pad):
    """Fuse two 3x3 HWIO convs into one padded, transposed matmul weight.

    Returns W^T of shape (2*cout, 9*pad) where column pad*t + c holds
    [wA; wB][dy, dx, c, :] for tap t = dy*3 + dx (zero in the pad columns),
    plus the stacked bias column (2*cout, 1).
    """
    w = jnp.concatenate([wA, wB], axis=-1)                      # (3,3,cin,2*cout)
    w = w.reshape(9, cin, 2 * cout).astype(jnp.float32)
    wp = jnp.zeros((9, pad, 2 * cout), jnp.float32).at[:, :cin, :].set(w)
    wT = wp.reshape(9 * pad, 2 * cout).T                        # (2*cout, 9*pad)
    b = jnp.concatenate([bA, bB]).reshape(2 * cout, 1).astype(jnp.float32)
    return wT, b


def _pick_images_per_step(N, HW, C, K1, K2, budget_bytes=32 * 1024 * 1024):
    """Images per grid step: as many as fit VMEM, keeping >=2 steps for v7x's 2 TCs."""
    # f32 bytes per image in one block: double-buffered in/out blocks, the two
    # im2col scratches, double-buffered mask, plus slack for intermediates.
    per_img = 4 * HW * (2 * C + 2 * C + K1 + K2 + 2 * 9 + 8 * C)
    cap = max(1, budget_bytes // per_img)
    min_steps = 2 if N >= 2 else 1
    best = 1
    for b in range(1, N + 1):
        if N % b:
            continue
        if b > cap or N // b < min_steps:
            break
        if (b * HW) % 128 != 0 and b != N:
            continue                      # block lane dim must be 128-aligned
        best = b
    return best


def _make_kernel(H, W, C1, C2, pad1, pad2, lanes, clamp):
    def _fill_im2col(scr_ref, src, mask, cin, pad):
        """Write rolled+masked taps of `src` (cin, lanes) into 8-row-aligned scratch rows."""
        scr_ref[...] = jnp.zeros_like(scr_ref)   # pad rows must be exactly zero
        t = 0
        for dy in range(3):
            for dx in range(3):
                d = (dy - 1) * W + (dx - 1)
                # result[:, i] = src[:, i + d]; wrap-around lanes are masked anyway.
                tap = src if d == 0 else pltpu.roll(src, (-d) % lanes, axis=1)
                scr_ref[pad * t: pad * t + cin, :] = tap * mask[t:t + 1, :]
                t += 1

    def kernel(x_ref, mask_ref, wef_ref, bef_ref, wgh_ref, bgh_ref, out_ref,
               p2_ref, p1_ref):
        x = x_ref[...].astype(jnp.float32)        # (C, lanes), lane-dense
        x1 = x[:C1, :]
        x2 = x[C1:, :]
        mask = mask_ref[...]                      # (9, lanes)

        # E(x2), F(x2) fused: one MXU call, K = 9*pad2, N = lanes.
        _fill_im2col(p2_ref, x2, mask, C2, pad2)
        ef = jnp.dot(wef_ref[...], p2_ref[...],
                     preferred_element_type=jnp.float32) + bef_ref[...]
        e, f = ef[:C1, :], ef[C1:, :]

        # y1 = x1 * exp(sigmoid(E(x2))*2 - 1) + F(x2);  2*sigmoid(z) - 1 == tanh(z/2)
        y1 = x1 * jnp.exp(jnp.tanh(e * 0.5)) + f
        out_ref[:C1, :] = y1.astype(out_ref.dtype)

        # G(y1), H(y1) fused: one MXU call, K = 9*pad1, N = lanes.
        _fill_im2col(p1_ref, y1, mask, C1, pad1)
        gh = jnp.dot(wgh_ref[...], p1_ref[...],
                     preferred_element_type=jnp.float32) + bgh_ref[...]
        g, hh = gh[:C2, :], gh[C2:, :]

        s = clamp * jnp.tanh(hh * 0.5)
        y2 = x2 * jnp.exp(s) + g
        out_ref[C1:, :] = y2.astype(out_ref.dtype)

    return kernel


def inv_block_exp_plus(x_nchw, params, clamp=1.0):
    """Forward pass (rev=False) of InvBlockExpPlus.  x_nchw: (N, C, H, W)."""
    N, C, H, W = x_nchw.shape
    C1 = params["split1"]
    C2 = C - C1
    HW = H * W
    pad1 = -(-C1 // 8) * 8
    pad2 = -(-C2 // 8) * 8
    K1, K2 = 9 * pad1, 9 * pad2

    B = _pick_images_per_step(N, HW, C, K1, K2)
    steps = N // B
    lanes = B * HW

    # (N, C, H, W) -> (C, N*HW): batch folded onto the lane axis (one wrapper transpose).
    x_cl = jnp.transpose(x_nchw.reshape(N, C, HW), (1, 0, 2)).reshape(C, N * HW)

    # Pack the four 3x3 HWIO conv weights into two fused, 8-row-padded, transposed
    # matrices plus two bias columns (wrapper-side layout plumbing, done once).
    wEF_T, bEF = _pack_weights(params["wE"], params["wF"],
                               params["bE"], params["bF"], C2, C1, pad2)
    wGH_T, bGH = _pack_weights(params["wG"], params["wH"],
                               params["bG"], params["bH"], C1, C2, pad1)

    mask = jnp.tile(_tap_mask(H, W), (1, B))            # (9, lanes), per-image validity

    kernel = _make_kernel(H, W, C1, C2, pad1, pad2, lanes, clamp)
    full = lambda a: pl.BlockSpec(a.shape, lambda n: (0,) * a.ndim)

    out = pl.pallas_call(
        kernel,
        out_shape=jax.ShapeDtypeStruct((C, N * HW), x_nchw.dtype),
        grid_spec=pltpu.PrefetchScalarGridSpec(
            num_scalar_prefetch=0,
            grid=(steps,),
            in_specs=[
                pl.BlockSpec((C, lanes), lambda n: (0, n)),
                full(mask), full(wEF_T), full(bEF), full(wGH_T), full(bGH),
            ],
            out_specs=pl.BlockSpec((C, lanes), lambda n: (0, n)),
            scratch_shapes=[pltpu.VMEM((K2, lanes), jnp.float32),
                            pltpu.VMEM((K1, lanes), jnp.float32)],
        ),
        compiler_params=pltpu.CompilerParams(
            dimension_semantics=("parallel",),
            vmem_limit_bytes=48 * 1024 * 1024),
    )(x_cl, mask, wEF_T, bEF, wGH_T, bGH)

    # (C, N*HW) -> NCHW.
    return jnp.transpose(out.reshape(C, N, HW), (1, 0, 2)).reshape(N, C, H, W)


# ---------------------- pure-JAX reference (for checking) ----------------------
def _conv3x3_ref(x_nhwc, w, b):
    y = jax.lax.conv_general_dilated(
        x_nhwc, w, (1, 1), "SAME",
        dimension_numbers=("NHWC", "HWIO", "NHWC"))
    return y + b[None, None, None, :]


def ref_forward(x_nchw, params, clamp=1.0):
    C1 = params["split1"]
    x = jnp.transpose(x_nchw, (0, 2, 3, 1))
    x1, x2 = x[..., :C1], x[..., C1:]
    e = _conv3x3_ref(x2, params["wE"], params["bE"])
    f = _conv3x3_ref(x2, params["wF"], params["bF"])
    y1 = x1 * jnp.exp(jax.nn.sigmoid(e) * 2.0 - 1.0) + f
    s = clamp * (jax.nn.sigmoid(_conv3x3_ref(y1, params["wH"], params["bH"])) * 2.0 - 1.0)
    y2 = x2 * jnp.exp(s) + _conv3x3_ref(y1, params["wG"], params["bG"])
    y = jnp.concatenate([y1, y2], axis=-1)
    return jnp.transpose(y, (0, 3, 1, 2))


if __name__ == "__main__":
    # N=4 exercises the batched lane layout (2 images per grid step, 2 grid steps).
    N, C, H, W = 4, 4, 16, 16
    channel_split_num = 2
    C1, C2 = channel_split_num, C - channel_split_num
    clamp = 1.0

    key = jax.random.PRNGKey(0)
    ks = jax.random.split(key, 9)
    x = jax.random.normal(ks[0], (N, C, H, W), jnp.float32)

    # deterministic subnet parameters (3x3 conv HWIO weights + bias)
    params = {
        "split1": C1,
        "wE": 0.1 * jax.random.normal(ks[1], (3, 3, C2, C1), jnp.float32),
        "bE": 0.1 * jax.random.normal(ks[2], (C1,), jnp.float32),
        "wF": 0.1 * jax.random.normal(ks[3], (3, 3, C2, C1), jnp.float32),
        "bF": 0.1 * jax.random.normal(ks[4], (C1,), jnp.float32),
        "wG": 0.1 * jax.random.normal(ks[5], (3, 3, C1, C2), jnp.float32),
        "bG": 0.1 * jax.random.normal(ks[6], (C2,), jnp.float32),
        "wH": 0.1 * jax.random.normal(ks[7], (3, 3, C1, C2), jnp.float32),
        "bH": 0.1 * jax.random.normal(ks[8], (C2,), jnp.float32),
    }

    out = inv_block_exp_plus(x, params, clamp=clamp)
    out = jax.block_until_ready(out)

    ref = jax.block_until_ready(ref_forward(x, params, clamp=clamp))
    np.testing.assert_allclose(np.asarray(out), np.asarray(ref), atol=1e-4, rtol=1e-4)

    print("KERNEL_OK")
</pallas_src>

<mosaic_0001>
module attributes {stable_mosaic.version = 11 : i64} {
  func.func @kernel(%arg0: i32, %arg1: memref<4x512xf32, #tpu.memory_space<vmem>>, %arg2: memref<9x512xf32, #tpu.memory_space<vmem>>, %arg3: memref<4x72xf32, #tpu.memory_space<vmem>>, %arg4: memref<4x1xf32, #tpu.memory_space<vmem>>, %arg5: memref<4x72xf32, #tpu.memory_space<vmem>>, %arg6: memref<4x1xf32, #tpu.memory_space<vmem>>, %arg7: memref<4x512xf32, #tpu.memory_space<vmem>>, %arg8: memref<72x512xf32, #tpu.memory_space<vmem>>, %arg9: memref<72x512xf32, #tpu.memory_space<vmem>>) attributes {dimension_semantics = [#tpu.dimension_semantics<parallel>], iteration_bounds = array<i64: 2>, scalar_prefetch = 0 : i64, scratch_operands = 2 : i64, tpu.core_type = #tpu.core_type<tc>, window_params = [{transform_indices = @transform_0, window_bounds = array<i64: 4, 512>}, {pipeline_mode = #tpu.pipeline_mode<synchronous>, transform_indices = @transform_1, window_bounds = array<i64: 9, 512>}, {pipeline_mode = #tpu.pipeline_mode<synchronous>, transform_indices = @transform_2, window_bounds = array<i64: 4, 72>}, {pipeline_mode = #tpu.pipeline_mode<synchronous>, transform_indices = @transform_3, window_bounds = array<i64: 4, 1>}, {pipeline_mode = #tpu.pipeline_mode<synchronous>, transform_indices = @transform_4, window_bounds = array<i64: 4, 72>}, {pipeline_mode = #tpu.pipeline_mode<synchronous>, transform_indices = @transform_5, window_bounds = array<i64: 4, 1>}, {transform_indices = @transform_6, window_bounds = array<i64: 4, 512>}]} {
    %c0 = arith.constant 0 : index
    %c0_0 = arith.constant 0 : index
    %0 = vector.load %arg1[%c0, %c0_0] : memref<4x512xf32, #tpu.memory_space<vmem>>, vector<4x512xf32>
    %1 = vector.extract_strided_slice %0 {offsets = [0, 0], sizes = [2, 512], strides = [1, 1]} : vector<4x512xf32> to vector<2x512xf32>
    %2 = vector.extract_strided_slice %0 {offsets = [2, 0], sizes = [2, 512], strides = [1, 1]} : vector<4x512xf32> to vector<2x512xf32>
    %c0_1 = arith.constant 0 : index
    %c0_2 = arith.constant 0 : index
    %3 = vector.load %arg2[%c0_1, %c0_2] : memref<9x512xf32, #tpu.memory_space<vmem>>, vector<9x512xf32>
    %cst = arith.constant 0.000000e+00 : f32
    %4 = vector.broadcast %cst : f32 to vector<72x512xf32>
    %c0_3 = arith.constant 0 : index
    %c0_4 = arith.constant 0 : index
    %5 = vector.load %arg8[%c0_3, %c0_4] : memref<72x512xf32, #tpu.memory_space<vmem>>, vector<72x512xf32>
    tpu.vector_store %arg8[%c0_3, %c0_4], %4 {strides = array<i32>} : memref<72x512xf32, #tpu.memory_space<vmem>>, vector<72x512xf32>,
    %c17_i32 = arith.constant 17 : i32
    %6 = tpu.dynamic_rotate %2 by %c17_i32 dim 1 : vector<2x512xf32>, i32 -> vector<2x512xf32>
    %7 = vector.extract_strided_slice %3 {offsets = [0, 0], sizes = [1, 512], strides = [1, 1]} : vector<9x512xf32> to vector<1x512xf32>
    %8 = vector.broadcast %7 : vector<1x512xf32> to vector<2x512xf32>
    %9 = arith.mulf %6, %8 : vector<2x512xf32>
    %c0_5 = arith.constant 0 : index
    %c0_6 = arith.constant 0 : index
    %10 = vector.load %arg8[%c0_5, %c0_6] : memref<72x512xf32, #tpu.memory_space<vmem>>, vector<2x512xf32>
    tpu.vector_store %arg8[%c0_5, %c0_6], %9 {strides = array<i32>} : memref<72x512xf32, #tpu.memory_space<vmem>>, vector<2x512xf32>,
    %c16_i32 = arith.constant 16 : i32
    %11 = tpu.dynamic_rotate %2 by %c16_i32 dim 1 : vector<2x512xf32>, i32 -> vector<2x512xf32>
    %12 = vector.extract_strided_slice %3 {offsets = [1, 0], sizes = [1, 512], strides = [1, 1]} : vector<9x512xf32> to vector<1x512xf32>
    %13 = vector.broadcast %12 : vector<1x512xf32> to vector<2x512xf32>
    %14 = arith.mulf %11, %13 : vector<2x512xf32>
    %c8 = arith.constant 8 : index
    %c0_7 = arith.constant 0 : index
    %15 = vector.load %arg8[%c8, %c0_7] : memref<72x512xf32, #tpu.memory_space<vmem>>, vector<2x512xf32>
    tpu.vector_store %arg8[%c8, %c0_7], %14 {strides = array<i32>} : memref<72x512xf32, #tpu.memory_space<vmem>>, vector<2x512xf32>,
    %c15_i32 = arith.constant 15 : i32
    %16 = tpu.dynamic_rotate %2 by %c15_i32 dim 1 : vector<2x512xf32>, i32 -> vector<2x512xf32>
    %17 = vector.extract_strided_slice %3 {offsets = [2, 0], sizes = [1, 512], strides = [1, 1]} : vector<9x512xf32> to vector<1x512xf32>
    %18 = vector.broadcast %17 : vector<1x512xf32> to vector<2x512xf32>
    %19 = arith.mulf %16, %18 : vector<2x512xf32>
    %c16 = arith.constant 16 : index
    %c0_8 = arith.constant 0 : index
    %20 = vector.load %arg8[%c16, %c0_8] : memref<72x512xf32, #tpu.memory_space<vmem>>, vector<2x512xf32>
    tpu.vector_store %arg8[%c16, %c0_8], %19 {strides = array<i32>} : memref<72x512xf32, #tpu.memory_space<vmem>>, vector<2x512xf32>,
    %c1_i32 = arith.constant 1 : i32
    %21 = tpu.dynamic_rotate %2 by %c1_i32 dim 1 : vector<2x512xf32>, i32 -> vector<2x512xf32>
    %22 = vector.extract_strided_slice %3 {offsets = [3, 0], sizes = [1, 512], strides = [1, 1]} : vector<9x512xf32> to vector<1x512xf32>
    %23 = vector.broadcast %22 : vector<1x512xf32> to vector<2x512xf32>
    %24 = arith.mulf %21, %23 : vector<2x512xf32>
    %c24 = arith.constant 24 : index
    %c0_9 = arith.constant 0 : index
    %25 = vector.load %arg8[%c24, %c0_9] : memref<72x512xf32, #tpu.memory_space<vmem>>, vector<2x512xf32>
    tpu.vector_store %arg8[%c24, %c0_9], %24 {strides = array<i32>} : memref<72x512xf32, #tpu.memory_space<vmem>>, vector<2x512xf32>,
    %26 = vector.extract_strided_slice %3 {offsets = [4, 0], sizes = [1, 512], strides = [1, 1]} : vector<9x512xf32> to vector<1x512xf32>
    %27 = vector.broadcast %26 : vector<1x512xf32> to vector<2x512xf32>
    %28 = arith.mulf %2, %27 : vector<2x512xf32>
    %c32 = arith.constant 32 : index
    %c0_10 = arith.constant 0 : index
    %29 = vector.load %arg8[%c32, %c0_10] : memref<72x512xf32, #tpu.memory_space<vmem>>, vector<2x512xf32>
    tpu.vector_store %arg8[%c32, %c0_10], %28 {strides = array<i32>} : memref<72x512xf32, #tpu.memory_space<vmem>>, vector<2x512xf32>,
    %c511_i32 = arith.constant 511 : i32
    %30 = tpu.dynamic_rotate %2 by %c511_i32 dim 1 : vector<2x512xf32>, i32 -> vector<2x512xf32>
    %31 = vector.extract_strided_slice %3 {offsets = [5, 0], sizes = [1, 512], strides = [1, 1]} : vector<9x512xf32> to vector<1x512xf32>
    %32 = vector.broadcast %31 : vector<1x512xf32> to vector<2x512xf32>
    %33 = arith.mulf %30, %32 : vector<2x512xf32>
    %c40 = arith.constant 40 : index
    %c0_11 = arith.constant 0 : index
    %34 = vector.load %arg8[%c40, %c0_11] : memref<72x512xf32, #tpu.memory_space<vmem>>, vector<2x512xf32>
    tpu.vector_store %arg8[%c40, %c0_11], %33 {strides = array<i32>} : memref<72x512xf32, #tpu.memory_space<vmem>>, vector<2x512xf32>,
    %c497_i32 = arith.constant 497 : i32
    %35 = tpu.dynamic_rotate %2 by %c497_i32 dim 1 : vector<2x512xf32>, i32 -> vector<2x512xf32>
    %36 = vector.extract_strided_slice %3 {offsets = [6, 0], sizes = [1, 512], strides = [1, 1]} : vector<9x512xf32> to vector<1x512xf32>
    %37 = vector.broadcast %36 : vector<1x512xf32> to vector<2x512xf32>
    %38 = arith.mulf %35, %37 : vector<2x512xf32>
    %c48 = arith.constant 48 : index
    %c0_12 = arith.constant 0 : index
    %39 = vector.load %arg8[%c48, %c0_12] : memref<72x512xf32, #tpu.memory_space<vmem>>, vector<2x512xf32>
    tpu.vector_store %arg8[%c48, %c0_12], %38 {strides = array<i32>} : memref<72x512xf32, #tpu.memory_space<vmem>>, vector<2x512xf32>,
    %c496_i32 = arith.constant 496 : i32
    %40 = tpu.dynamic_rotate %2 by %c496_i32 dim 1 : vector<2x512xf32>, i32 -> vector<2x512xf32>
    %41 = vector.extract_strided_slice %3 {offsets = [7, 0], sizes = [1, 512], strides = [1, 1]} : vector<9x512xf32> to vector<1x512xf32>
    %42 = vector.broadcast %41 : vector<1x512xf32> to vector<2x512xf32>
    %43 = arith.mulf %40, %42 : vector<2x512xf32>
    %c56 = arith.constant 56 : index
    %c0_13 = arith.constant 0 : index
    %44 = vector.load %arg8[%c56, %c0_13] : memref<72x512xf32, #tpu.memory_space<vmem>>, vector<2x512xf32>
    tpu.vector_store %arg8[%c56, %c0_13], %43 {strides = array<i32>} : memref<72x512xf32, #tpu.memory_space<vmem>>, vector<2x512xf32>,
    %c495_i32 = arith.constant 495 : i32
    %45 = tpu.dynamic_rotate %2 by %c495_i32 dim 1 : vector<2x512xf32>, i32 -> vector<2x512xf32>
    %46 = vector.extract_strided_slice %3 {offsets = [8, 0], sizes = [1, 512], strides = [1, 1]} : vector<9x512xf32> to vector<1x512xf32>
    %47 = vector.broadcast %46 : vector<1x512xf32> to vector<2x512xf32>
    %48 = arith.mulf %45, %47 : vector<2x512xf32>
    %c64 = arith.constant 64 : index
    %c0_14 = arith.constant 0 : index
    %49 = vector.load %arg8[%c64, %c0_14] : memref<72x512xf32, #tpu.memory_space<vmem>>, vector<2x512xf32>
    tpu.vector_store %arg8[%c64, %c0_14], %48 {strides = array<i32>} : memref<72x512xf32, #tpu.memory_space<vmem>>, vector<2x512xf32>,
    %c0_15 = arith.constant 0 : index
    %c0_16 = arith.constant 0 : index
    %50 = vector.load %arg3[%c0_15, %c0_16] : memref<4x72xf32, #tpu.memory_space<vmem>>, vector<4x72xf32>
    %c0_17 = arith.constant 0 : index
    %c0_18 = arith.constant 0 : index
    %51 = vector.load %arg8[%c0_17, %c0_18] : memref<72x512xf32, #tpu.memory_space<vmem>>, vector<72x512xf32>
    %cst_19 = arith.constant dense<0.000000e+00> : vector<4x512xf32>
    %52 = tpu.matmul %50, %51, %cst_19 {dimension_numbers = #tpu.dot_dimension_numbers<[1], [0], [0], [1], [0, 0, 1, 1], [], []>} : vector<4x72xf32>, vector<72x512xf32>, vector<4x512xf32> -> vector<4x512xf32>
    %c0_20 = arith.constant 0 : index
    %c0_21 = arith.constant 0 : index
    %53 = vector.load %arg4[%c0_20, %c0_21] : memref<4x1xf32, #tpu.memory_space<vmem>>, vector<4x1xf32>
    %54 = vector.broadcast %53 : vector<4x1xf32> to vector<4x512xf32>
    %55 = arith.addf %52, %54 : vector<4x512xf32>
    %56 = vector.extract_strided_slice %55 {offsets = [0, 0], sizes = [2, 512], strides = [1, 1]} : vector<4x512xf32> to vector<2x512xf32>
    %57 = vector.extract_strided_slice %55 {offsets = [2, 0], sizes = [2, 512], strides = [1, 1]} : vector<4x512xf32> to vector<2x512xf32>
    %cst_22 = arith.constant 5.000000e-01 : f32
    %58 = vector.broadcast %cst_22 : f32 to vector<2x512xf32>
    %59 = arith.mulf %56, %58 : vector<2x512xf32>
    %60 = math.tanh %59 : vector<2x512xf32>
    %61 = math.exp %60 : vector<2x512xf32>
    %62 = arith.mulf %1, %61 : vector<2x512xf32>
    %63 = arith.addf %62, %57 : vector<2x512xf32>
    %c0_23 = arith.constant 0 : index
    %c0_24 = arith.constant 0 : index
    %64 = vector.load %arg7[%c0_23, %c0_24] : memref<4x512xf32, #tpu.memory_space<vmem>>, vector<2x512xf32>
    tpu.vector_store %arg7[%c0_23, %c0_24], %63 {strides = array<i32>} : memref<4x512xf32, #tpu.memory_space<vmem>>, vector<2x512xf32>,
    %cst_25 = arith.constant 0.000000e+00 : f32
    %65 = vector.broadcast %cst_25 : f32 to vector<72x512xf32>
    %c0_26 = arith.constant 0 : index
    %c0_27 = arith.constant 0 : index
    %66 = vector.load %arg9[%c0_26, %c0_27] : memref<72x512xf32, #tpu.memory_space<vmem>>, vector<72x512xf32>
    tpu.vector_store %arg9[%c0_26, %c0_27], %65 {strides = array<i32>} : memref<72x512xf32, #tpu.memory_space<vmem>>, vector<72x512xf32>,
    %c17_i32_28 = arith.constant 17 : i32
    %67 = tpu.dynamic_rotate %63 by %c17_i32_28 dim 1 : vector<2x512xf32>, i32 -> vector<2x512xf32>
    %68 = vector.extract_strided_slice %3 {offsets = [0, 0], sizes = [1, 512], strides = [1, 1]} : vector<9x512xf32> to vector<1x512xf32>
    %69 = vector.broadcast %68 : vector<1x512xf32> to vector<2x512xf32>
    %70 = arith.mulf %67, %69 : vector<2x512xf32>
    %c0_29 = arith.constant 0 : index
    %c0_30 = arith.constant 0 : index
    %71 = vector.load %arg9[%c0_29, %c0_30] : memref<72x512xf32, #tpu.memory_space<vmem>>, vector<2x512xf32>
    tpu.vector_store %arg9[%c0_29, %c0_30], %70 {strides = array<i32>} : memref<72x512xf32, #tpu.memory_space<vmem>>, vector<2x512xf32>,
    %c16_i32_31 = arith.constant 16 : i32
    %72 = tpu.dynamic_rotate %63 by %c16_i32_31 dim 1 : vector<2x512xf32>, i32 -> vector<2x512xf32>
    %73 = vector.extract_strided_slice %3 {offsets = [1, 0], sizes = [1, 512], strides = [1, 1]} : vector<9x512xf32> to vector<1x512xf32>
    %74 = vector.broadcast %73 : vector<1x512xf32> to vector<2x512xf32>
    %75 = arith.mulf %72, %74 : vector<2x512xf32>
    %c8_32 = arith.constant 8 : index
    %c0_33 = arith.constant 0 : index
    %76 = vector.load %arg9[%c8_32, %c0_33] : memref<72x512xf32, #tpu.memory_space<vmem>>, vector<2x512xf32>
    tpu.vector_store %arg9[%c8_32, %c0_33], %75 {strides = array<i32>} : memref<72x512xf32, #tpu.memory_space<vmem>>, vector<2x512xf32>,
    %c15_i32_34 = arith.constant 15 : i32
    %77 = tpu.dynamic_rotate %63 by %c15_i32_34 dim 1 : vector<2x512xf32>, i32 -> vector<2x512xf32>
    %78 = vector.extract_strided_slice %3 {offsets = [2, 0], sizes = [1, 512], strides = [1, 1]} : vector<9x512xf32> to vector<1x512xf32>
    %79 = vector.broadcast %78 : vector<1x512xf32> to vector<2x512xf32>
    %80 = arith.mulf %77, %79 : vector<2x512xf32>
    %c16_35 = arith.constant 16 : index
    %c0_36 = arith.constant 0 : index
    %81 = vector.load %arg9[%c16_35, %c0_36] : memref<72x512xf32, #tpu.memory_space<vmem>>, vector<2x512xf32>
    tpu.vector_store %arg9[%c16_35, %c0_36], %80 {strides = array<i32>} : memref<72x512xf32, #tpu.memory_space<vmem>>, vector<2x512xf32>,
    %c1_i32_37 = arith.constant 1 : i32
    %82 = tpu.dynamic_rotate %63 by %c1_i32_37 dim 1 : vector<2x512xf32>, i32 -> vector<2x512xf32>
    %83 = vector.extract_strided_slice %3 {offsets = [3, 0], sizes = [1, 512], strides = [1, 1]} : vector<9x512xf32> to vector<1x512xf32>
    %84 = vector.broadcast %83 : vector<1x512xf32> to vector<2x512xf32>
    %85 = arith.mulf %82, %84 : vector<2x512xf32>
    %c24_38 = arith.constant 24 : index
    %c0_39 = arith.constant 0 : index
    %86 = vector.load %arg9[%c24_38, %c0_39] : memref<72x512xf32, #tpu.memory_space<vmem>>, vector<2x512xf32>
    tpu.vector_store %arg9[%c24_38, %c0_39], %85 {strides = array<i32>} : memref<72x512xf32, #tpu.memory_space<vmem>>, vector<2x512xf32>,
    %87 = vector.extract_strided_slice %3 {offsets = [4, 0], sizes = [1, 512], strides = [1, 1]} : vector<9x512xf32> to vector<1x512xf32>
    %88 = vector.broadcast %87 : vector<1x512xf32> to vector<2x512xf32>
    %89 = arith.mulf %63, %88 : vector<2x512xf32>
    %c32_40 = arith.constant 32 : index
    %c0_41 = arith.constant 0 : index
    %90 = vector.load %arg9[%c32_40, %c0_41] : memref<72x512xf32, #tpu.memory_space<vmem>>, vector<2x512xf32>
    tpu.vector_store %arg9[%c32_40, %c0_41], %89 {strides = array<i32>} : memref<72x512xf32, #tpu.memory_space<vmem>>, vector<2x512xf32>,
    %c511_i32_42 = arith.constant 511 : i32
    %91 = tpu.dynamic_rotate %63 by %c511_i32_42 dim 1 : vector<2x512xf32>, i32 -> vector<2x512xf32>
    %92 = vector.extract_strided_slice %3 {offsets = [5, 0], sizes = [1, 512], strides = [1, 1]} : vector<9x512xf32> to vector<1x512xf32>
    %93 = vector.broadcast %92 : vector<1x512xf32> to vector<2x512xf32>
    %94 = arith.mulf %91, %93 : vector<2x512xf32>
    %c40_43 = arith.constant 40 : index
    %c0_44 = arith.constant 0 : index
    %95 = vector.load %arg9[%c40_43, %c0_44] : memref<72x512xf32, #tpu.memory_space<vmem>>, vector<2x512xf32>
    tpu.vector_store %arg9[%c40_43, %c0_44], %94 {strides = array<i32>} : memref<72x512xf32, #tpu.memory_space<vmem>>, vector<2x512xf32>,
    %c497_i32_45 = arith.constant 497 : i32
    %96 = tpu.dynamic_rotate %63 by %c497_i32_45 dim 1 : vector<2x512xf32>, i32 -> vector<2x512xf32>
    %97 = vector.extract_strided_slice %3 {offsets = [6, 0], sizes = [1, 512], strides = [1, 1]} : vector<9x512xf32> to vector<1x512xf32>
    %98 = vector.broadcast %97 : vector<1x512xf32> to vector<2x512xf32>
    %99 = arith.mulf %96, %98 : vector<2x512xf32>
    %c48_46 = arith.constant 48 : index
    %c0_47 = arith.constant 0 : index
    %100 = vector.load %arg9[%c48_46, %c0_47] : memref<72x512xf32, #tpu.memory_space<vmem>>, vector<2x512xf32>
    tpu.vector_store %arg9[%c48_46, %c0_47], %99 {strides = array<i32>} : memref<72x512xf32, #tpu.memory_space<vmem>>, vector<2x512xf32>,
    %c496_i32_48 = arith.constant 496 : i32
    %101 = tpu.dynamic_rotate %63 by %c496_i32_48 dim 1 : vector<2x512xf32>, i32 -> vector<2x512xf32>
    %102 = vector.extract_strided_slice %3 {offsets = [7, 0], sizes = [1, 512], strides = [1, 1]} : vector<9x512xf32> to vector<1x512xf32>
    %103 = vector.broadcast %102 : vector<1x512xf32> to vector<2x512xf32>
    %104 = arith.mulf %101, %103 : vector<2x512xf32>
    %c56_49 = arith.constant 56 : index
    %c0_50 = arith.constant 0 : index
    %105 = vector.load %arg9[%c56_49, %c0_50] : memref<72x512xf32, #tpu.memory_space<vmem>>, vector<2x512xf32>
    tpu.vector_store %arg9[%c56_49, %c0_50], %104 {strides = array<i32>} : memref<72x512xf32, #tpu.memory_space<vmem>>, vector<2x512xf32>,
    %c495_i32_51 = arith.constant 495 : i32
    %106 = tpu.dynamic_rotate %63 by %c495_i32_51 dim 1 : vector<2x512xf32>, i32 -> vector<2x512xf32>
    %107 = vector.extract_strided_slice %3 {offsets = [8, 0], sizes = [1, 512], strides = [1, 1]} : vector<9x512xf32> to vector<1x512xf32>
    %108 = vector.broadcast %107 : vector<1x512xf32> to vector<2x512xf32>
    %109 = arith.mulf %106, %108 : vector<2x512xf32>
    %c64_52 = arith.constant 64 : index
    %c0_53 = arith.constant 0 : index
    %110 = vector.load %arg9[%c64_52, %c0_53] : memref<72x512xf32, #tpu.memory_space<vmem>>, vector<2x512xf32>
    tpu.vector_store %arg9[%c64_52, %c0_53], %109 {strides = array<i32>} : memref<72x512xf32, #tpu.memory_space<vmem>>, vector<2x512xf32>,
    %c0_54 = arith.constant 0 : index
    %c0_55 = arith.constant 0 : index
    %111 = vector.load %arg5[%c0_54, %c0_55] : memref<4x72xf32, #tpu.memory_space<vmem>>, vector<4x72xf32>
    %c0_56 = arith.constant 0 : index
    %c0_57 = arith.constant 0 : index
    %112 = vector.load %arg9[%c0_56, %c0_57] : memref<72x512xf32, #tpu.memory_space<vmem>>, vector<72x512xf32>
    %cst_58 = arith.constant dense<0.000000e+00> : vector<4x512xf32>
    %113 = tpu.matmul %111, %112, %cst_58 {dimension_numbers = #tpu.dot_dimension_numbers<[1], [0], [0], [1], [0, 0, 1, 1], [], []>} : vector<4x72xf32>, vector<72x512xf32>, vector<4x512xf32> -> vector<4x512xf32>
    %c0_59 = arith.constant 0 : index
    %c0_60 = arith.constant 0 : index
    %114 = vector.load %arg6[%c0_59, %c0_60] : memref<4x1xf32, #tpu.memory_space<vmem>>, vector<4x1xf32>
    %115 = vector.broadcast %114 : vector<4x1xf32> to vector<4x512xf32>
    %116 = arith.addf %113, %115 : vector<4x512xf32>
    %117 = vector.extract_strided_slice %116 {offsets = [0, 0], sizes = [2, 512], strides = [1, 1]} : vector<4x512xf32> to vector<2x512xf32>
    %118 = vector.extract_strided_slice %116 {offsets = [2, 0], sizes = [2, 512], strides = [1, 1]} : vector<4x512xf32> to vector<2x512xf32>
    %cst_61 = arith.constant 5.000000e-01 : f32
    %119 = vector.broadcast %cst_61 : f32 to vector<2x512xf32>
    %120 = arith.mulf %118, %119 : vector<2x512xf32>
    %121 = math.tanh %120 : vector<2x512xf32>
    %cst_62 = arith.constant 1.000000e+00 : f32
    %122 = vector.broadcast %cst_62 : f32 to vector<2x512xf32>
    %123 = arith.mulf %122, %121 : vector<2x512xf32>
    %124 = math.exp %123 : vector<2x512xf32>
    %125 = arith.mulf %2, %124 : vector<2x512xf32>
    %126 = arith.addf %125, %117 : vector<2x512xf32>
    %c2 = arith.constant 2 : index
    %c0_63 = arith.constant 0 : index
    %127 = vector.load %arg7[%c2, %c0_63] : memref<4x512xf32, #tpu.memory_space<vmem>>, vector<2x512xf32>
    tpu.vector_store %arg7[%c2, %c0_63], %126 {strides = array<i32>} : memref<4x512xf32, #tpu.memory_space<vmem>>, vector<2x512xf32>,
    return
  }
  func.func @transform_0(%arg0: i32) -> (i32, i32) {
    %c0_i32 = arith.constant 0 : i32
    %c0_i32_0 = arith.constant 0 : i32
    return %c0_i32, %arg0 : i32, i32
  }
  func.func @transform_1(%arg0: i32) -> (i32, i32) {
    %c0_i32 = arith.constant 0 : i32
    %c0_i32_0 = arith.constant 0 : i32
    %c0_i32_1 = arith.constant 0 : i32
    return %c0_i32, %c0_i32_0 : i32, i32
  }
  func.func @transform_2(%arg0: i32) -> (i32, i32) {
    %c0_i32 = arith.constant 0 : i32
    %c0_i32_0 = arith.constant 0 : i32
    %c0_i32_1 = arith.constant 0 : i32
    return %c0_i32, %c0_i32_0 : i32, i32
  }
  func.func @transform_3(%arg0: i32) -> (i32, i32) {
    %c0_i32 = arith.constant 0 : i32
    %c0_i32_0 = arith.constant 0 : i32
    %c0_i32_1 = arith.constant 0 : i32
    return %c0_i32, %c0_i32_0 : i32, i32
  }
  func.func @transform_4(%arg0: i32) -> (i32, i32) {
    %c0_i32 = arith.constant 0 : i32
    %c0_i32_0 = arith.constant 0 : i32
    %c0_i32_1 = arith.constant 0 : i32
    return %c0_i32, %c0_i32_0 : i32, i32
  }
  func.func @transform_5(%arg0: i32) -> (i32, i32) {
    %c0_i32 = arith.constant 0 : i32
    %c0_i32_0 = arith.constant 0 : i32
    %c0_i32_1 = arith.constant 0 : i32
    return %c0_i32, %c0_i32_0 : i32, i32
  }
  func.func @transform_6(%arg0: i32) -> (i32, i32) {
    %c0_i32 = arith.constant 0 : i32
    %c0_i32_0 = arith.constant 0 : i32
    return %c0_i32, %arg0 : i32, i32
  }
}

</mosaic_0001>

<bundles_post_ra>
// kernel: tpu_custom_call.1
= control target key start
LH: loop header
LB: loop body
LE: loop exit
PB: predicated region body
PF: predicated region fallthrough
CT: control target
= control target key end

     0   :  { %11 = vsyncpa [#allocation5], 0  ;;  %s2563_s0 = inlined_call_operand.hbm [shape: f32[4,1024], index: 0, kind: input, shape index: {}]   ;;  %s2564_s1 = inlined_call_operand.hbm [shape: f32[9,512], index: 1, kind: input, shape index: {}]   ;;  %s2565_s2 = inlined_call_operand.vmem [shape: f32[4,72], index: 2, kind: input, shape index: {}]   ;;  %s2566_s3 = inlined_call_operand.vmem [shape: f32[4,1], index: 3, kind: input, shape index: {}]   ;;  %s2567_s4 = inlined_call_operand.vmem [shape: f32[4,72], index: 4, kind: input, shape index: {}]   ;;  %s2568_s5 = inlined_call_operand.vmem [shape: f32[4,1], index: 5, kind: input, shape index: {}]   ;;  %s2569_s6 = inlined_call_operand.hbm [shape: f32[4,1024], index: 6, kind: output, shape index: {}]  }
   0x1   :  { %13 = vsyncpa [#allocation5 + $0x1], 0 }
   0x2   :  { %14 = vsyncpa [#allocation8], 0 }
   0x3   :  { %15 = vsyncpa [#allocation6], 0 }
   0x4   :  { %17 = vsyncpa [#allocation6 + $0x1], 0  ;;  %s1761_s21 = smov 0   ;;  %s1763_s22 = smov 0  }
   0x5   :  { %s1765_s23 = smov 0   ;;  %s1767_s24 = smov 0  }
   0x6 LB: > { %s196_s27 = sshll.u32 %s2564_s1, 4  ;;  %s1785_s28 = sadd.s32 4294967295, %s1711_s24   ;;  %s1711_s24 = sphi %s1767_s24, %s2579_s24   ;;  %s1707_s23 = sphi %s1765_s23, %s2578_s23   ;;  %s1703_s22 = sphi %s1763_s22, %s2577_s22   ;;  %s1699_s21 = sphi %s1761_s21, %s2576_s21   ;;  %s197_s27 = int_to_ptr.hbm [resolvable:$true] %s196_s27 }
   0x7   : > { %p1447_p0 = scmp.ge.s32.totalorder %s1711_s24, 1  ;;  %p44_p1 = scmp.eq.s32.totalorder %s1785_s28, 0 }
   0x8   : > { %p185_p2 = scmp.lt.s32.totalorder %s1711_s24, 3  ;;  %s1713_s30 = smov [#allocation7]  }
   0x9   : > { %s198_s7 = sshll.u32 %s1713_s30, 4  ;;  %s1714_s8 = smov 512   ;;  %s199_s7 = int_to_ptr.vmem [resolvable:$true] %s198_s7 }
   0xa   : > { %p1790_p3 = pnand %p1447_p0, %p185_p2  ;;  %s1715_s9 = smov 32  }
   0xb   : > { %s1446_s10 = sadd.s32 4294967294, %s1711_s24   ;;  %s1801_s11 = sadd.s32 1, %s1711_s24  }
   0xc   : > { %p1482_p4 = pneg %p1790_p3  ;;  %s30_s12 = sadd.s32 1, %s1707_s23 }
   0xd   : > { %s27_s13 = ssub.s32 %s1711_s24, %s1801_s11  ;;  %p37_p7 = scmp.ne.s32.totalorder %s1707_s23, %s1703_s22 }
   0xe   : > { %p1483_p6 = pnand %p1482_p4, %p44_p1  ;;  %p28_p8 = scmp.eq.s32.totalorder %s27_s13, 0 }
   0xf   : > { %p38_p9 = scmp.eq.s32.totalorder %s1711_s24, 0  ;;  %p43_p10 = scmp.ne.s32.totalorder %s1703_s22, %s1699_s21 }
  0x10   : > { %1485 = dma.hbm_to_vmem [thread:$0]  (!%p1483_p6), %s197_s27, 1024, %s199_s7, [#allocation8], %s1714_s8, %s1714_s8, %s1715_s9  }
  0x11   : > { %p172_p11 = scmp.eq.s32.totalorder %s1785_s28, 1  ;;  %p1817_p12 = por %p44_p1, %p43_p10 }
  0x12   : > { %s1813_s14 = scalar_select %p28_p8, %s1707_s23, %s30_s12  }
  0x13   : > { %p1821_p13 = por %p172_p11, %p37_p7  ;;  %p178_p0 = scmp.eq.s32.totalorder %s1446_s10, 1 }
  0x14   : > { %p39_p2 = por %p38_p9, %p37_p7  ;;  %s224_s17 = sand.u32 1, %s1707_s23  }
  0x15   : > { %p1826_p4 = por %p178_p0, %p43_p10  ;;  %p1495_p6 = scmp.lt.s32.totalorder %s1711_s24, 2 }
  0x16   : > { %s1450_s19 = sshll.u32 %s224_s17, 4  ;;  %s1472_s20 = sshll.u32 %s1711_s24, 4 }
  0x17   : > { %s233_s27 = scalar_lea.hbm %s2563_s0, %s1472_s20  ;;  %s228_s7 = scalar_lea.vmem [#allocation4], %s1450_s19 }
  0x18   : > { %s235_s30 = sshll.u32 %s233_s27, 4  ;;  %s237_s8 = sshll.u32 %s228_s7, 4  ;;  %s236_s30 = int_to_ptr.hbm [resolvable:$true] %s235_s30  ;;  %s238_s8 = int_to_ptr.vmem [resolvable:$true] %s237_s8 }
  0x19   : > { %p1835_p8 = pnand %p1495_p6, %p39_p2  ;;  %s225_s10 = scalar_lea.sflag [#allocation5], %s224_s17 }
  0x1a   : > { %s1611_s12 = sshra.s32 %s236_s30, 4  ;;  %s1618_s19 = scalar_lea.hbm %s2563_s0, 32  ;;  %s1612_s12 = int_to_ptr.hbm [resolvable:$true] %s1611_s12 }
  0x1b   : > { %s1613_s13 = scalar_lea.hbm %s1612_s12, 16  ;;  %p1615_p9 = pneg %p1835_p8 }
  0x1c   : > { %p1614_p7 = scmp.ne.s32.totalorder %s1612_s12, %s1613_s13  ;;  %p1619_p0 = scmp.lt.s32.totalorder %s1612_s12, %s2563_s0 }
  0x1d   : > { %p1620_p2 = scmp.lt.s32.totalorder %s1618_s19, %s1613_s13 }
  0x1e   : > { %p1616_p10 = pnand %p1615_p9, %p1614_p7 }
  0x1f   : > { %p1621_p6 = por %p1620_p2, %p1619_p0 }
  0x20   : > { %p1617_p11 = pneg %p1616_p10 }
  0x22   : > { %p1622_p5 = pnand %p1621_p6, %p1617_p11 }
  0x24   : > { %1625 = shalt.err (!%p1622_p5)
}
  0x25   : > { %1489 = dma.hbm_to_vmem [thread:$0]  (!%p1835_p8), %s236_s30, 256, %s238_s8, %s225_s10  }
  0x26   : > { %246 = sbr.rel (%p1790_p3) target bundleno = 854 (0x356), region = 44  ;;  %s1852_s17 = sand.u32 (!%p1790_p3), 1, %s1703_s22  }
  0x27   : > { %s1454_s7 = sshll.u32 (!%p1790_p3), %s1852_s17, 4  ;;  %s249_s20 = scalar_lea.sflag (!%p1790_p3), [#allocation5], %s1852_s17 }
  0x28   : > { %s252_s12 = scalar_lea.vmem (!%p1790_p3), [#allocation4], %s1454_s7 }
  0x2b   : > { %1686 = dma.done.wait (%p1817_p12), %s249_s20, 256  }
  0x2c   : > { %1688 = vsyncadd (%p1817_p12), %s249_s20, 4294967040 }
  0x2d   : > { %1690 = dma.done.wait (%p44_p1), [#allocation8], 1024  }
  0x2e   : > { %1692 = vsyncadd (%p44_p1), [#allocation8], 4294966272  ;;  %v1866_v0 = vld [vmem:[%s252_s12 + $0x8] sm:$0xff]  ;;  %v1869_v1 = vld [vmem:[%s252_s12] sm:$0xff]  ;;  %vm509_vm0 = vcmask 1043456   ;;  %s1716_s29 = smov 16  }
  0x2f   : > { %339 = vst [vmem:[#allocation1 + $0x10] ss:$2 sm:$0xff] %v1866_v0  ;;  %v1879_v5 = vld [vmem:[#allocation7 + $0x18] sm:$0xff]  ;;  %v1884_v7 = vld [vmem:[#allocation7 + $0x10] sm:$0xff]  ;;  %v1886_v8 = vld [vmem:[#allocation7 + $0x8] sm:$0xff]  ;;  %s1717_s15 = smov 15  }
  0x30   : > { %337 = vst [vmem:[#allocation1] ss:$2 sm:$0xff] %v1869_v1  ;;  %v502_v9 = vperm.slane %v1879_v5, 4  ;;  %v501_v10 = vperm.slane %v1884_v7, 4  ;;  %v500_v11 = vperm.slane %v1886_v8, 4  ;;  %v1892_v16 = vld [vmem:[#allocation7] sm:$0xff] }
  0x31   : > { %v499_v20 = vperm.slane %v1892_v16, 4  ;;  %s1718_s30 = smov 1   ;;  %s1719_s8 = smov 127   ;;  %vm742_vm9 = vcmask 588800  }
  0x32   : > { %v508_v14 = vrot.slane %v502_v9, 4  ;;  %v507_v21 = vrot.slane %v500_v11, 4  ;;  %s1720_s9 = smov 113   ;;  %s1721_s10 = smov 112  }
  0x33   : > { %s1722_s13 = smov 111   ;;  %s1724_s25 = smov 17  }
  0x34   : > { %v1903_v22 = vsel %vm509_vm0, %v501_v10, %v508_v14  ;;  %v1906_v25 = vsel %vm509_vm0, %v499_v20, %v507_v21  ;;  %s2279_s12 = scalar_lea.vmem [#allocation9], %s1454_s7  ;;  %s1350_s19 = scalar_lea.sflag [#allocation6], %s1852_s17 }
  0x35   : > { %v513_v27 = vrot.slane %v1903_v22, 6  ;;  %v512_v31 = vrot.slane %v1906_v25, 6 }
  0x36   : > { %v1872_v2 = vld.sshfl [vmem:[#allocation1 + $0x10] sm:$0xff pattern:$0x75316420]  ;;  %v1874_v3 = vld.sshfl [vmem:[#allocation1 + $0x18] sm:$0xff pattern:$0x75316420] }
  0x37   : > { %381 = vst [vmem:[#allocation1 + $0x10] ss:$2 sm:$0xff] %v1866_v0  ;;  %v1877_v4 = vld.sshfl [vmem:[#allocation1] sm:$0xff pattern:$0x75316420]  ;;  %v517_v32 = vmul.f32 %v513_v27, %v1866_v0  ;;  %v516_v34 = vmul.f32 %v512_v31, %v1869_v1  ;;  %v346_v27 = vrot.slane %v1872_v2, 2 }
  0x38   : > { %v1881_v6 = vld.sshfl [vmem:[#allocation1 + $0x8] sm:$0xff pattern:$0x75316420] }
  0x39   : > { %379 = vst [vmem:[#allocation1] ss:$2 sm:$0xff] %v1869_v1 }
  0x3e   : > { %v384_v12 = vld.sshfl [vmem:[#allocation1 + $0x10] sm:$0xff pattern:$0x75316420]  ;;  %v385_v13 = vld.sshfl [vmem:[#allocation1 + $0x18] sm:$0xff pattern:$0x75316420] }
  0x3f   : > { %421 = vst [vmem:[#allocation1 + $0x10] ss:$2 sm:$0xff] %v1866_v0  ;;  %v388_v15 = vrot.slane %v384_v12, 2  ;;  %v389_v17 = vrot.slane %v385_v13, 2 }
  0x40   : > { %v1894_v18 = vld.sshfl [vmem:[#allocation1] sm:$0xff pattern:$0x75316420]  ;;  %v1896_v19 = vld.sshfl [vmem:[#allocation1 + $0x8] sm:$0xff pattern:$0x75316420] }
  0x41   : > { %398 = vrot.lane.b32.xlu0 %v388_v15, %s1716_s29  ;;  %419 = vst [vmem:[#allocation1] ss:$2 sm:$0xff] %v1869_v1  ;;  %400 = vrot.lane.b32.xlu1 %v389_v17, %s1716_s29 }
  0x46   : > { %v424_v23 = vld.sshfl [vmem:[#allocation1 + $0x10] sm:$0xff pattern:$0x75316420]  ;;  %v425_v24 = vld.sshfl [vmem:[#allocation1 + $0x18] sm:$0xff pattern:$0x75316420] }
  0x47   : > { %v428_v26 = vrot.slane %v424_v23, 2  ;;  %v429_v28 = vrot.slane %v425_v24, 2  ;;  %461 = vst [vmem:[#allocation1 + $0x10] ss:$2 sm:$0xff] %v1866_v0 }
  0x48   : > { %v423_v29 = vld.sshfl [vmem:[#allocation1 + $0x8] sm:$0xff pattern:$0x75316420]  ;;  %v1910_v30 = vld.sshfl [vmem:[#allocation1] sm:$0xff pattern:$0x75316420] }
  0x49   : > { %438 = vrot.lane.b32.xlu2 %v428_v26, %s1717_s15  ;;  %440 = vrot.lane.b32.xlu0 %v429_v28, %s1717_s15  ;;  %459 = vst [vmem:[#allocation1] ss:$2 sm:$0xff] %v1869_v1  ;;  %v427_v33 = vrot.slane %v423_v29, 2  ;;  %v387_v28 = vrot.slane %v1896_v19, 2  ;;  %v1723_v29 = vmov 0.0   ;;  %v426_v19 = vrot.slane %v1910_v30, 2 }
  0x4a   : > { %309 = vst [vmem:[#allocation2 + $0x118] sm:$0xff] %v1723_v29  ;;  %v347_v30 = vrot.slane %v1874_v3, 2  ;;  %v345_v3 = vrot.slane %v1881_v6, 2  ;;  %v344_v6 = vrot.slane %v1877_v4, 2 }
  0x4b   : > { %299 = vst [vmem:[#allocation2 + $0xb0] sm:$0xff] %v1723_v29 }
  0x4c   : > { %300 = vst [vmem:[#allocation2 + $0xd0] sm:$0xff] %v1723_v29 }
  0x4d   : > { %301 = vst [vmem:[#allocation2 + $0x10] sm:$0xff] %v1723_v29 }
  0x4e   : > { %v465_v35 = vld.sshfl [vmem:[#allocation1 + $0x18] sm:$0xff pattern:$0x75316420]  ;;  %v464_v36 = vld.sshfl [vmem:[#allocation1 + $0x10] sm:$0xff pattern:$0x75316420] }
  0x4f   : > { %v469_v37 = vrot.slane %v465_v35, 2  ;;  %522 = vst [vmem:[#allocation1 + $0x10] ss:$2 sm:$0xff] %v517_v32  ;;  %v468_v41 = vrot.slane %v464_v36, 2  ;;  %v386_v32 = vrot.slane %v1894_v18, 2  ;;  %v449_v35 = vperm.slane %v1884_v7, 2 }
  0x50   : > { %v463_v38 = vld.sshfl [vmem:[#allocation1 + $0x8] sm:$0xff pattern:$0x75316420]  ;;  %v1918_v39 = vld.sshfl [vmem:[#allocation1] sm:$0xff pattern:$0x75316420] }
  0x51   : > { %436 = vrot.lane.b32.xlu2 %v427_v33, %s1717_s15  ;;  %480 = vrot.lane.b32.xlu0 %v469_v37, %s1718_s30  ;;  %v467_v40 = vrot.slane %v463_v38, 2  ;;  %520 = vst [vmem:[#allocation1] ss:$2 sm:$0xff] %v516_v34  ;;  %v466_v2 = vrot.slane %v1918_v39, 2  ;;  %v360_v33 = vlaneseq }
  0x52   : > { %302 = vst [vmem:[#allocation2 + $0x48] sm:$0xff] %v1723_v29 }
  0x53   : > { %476 = vrot.lane.b32.xlu1 %v467_v40, %s1718_s30  ;;  %303 = vst [vmem:[#allocation2 + $0x108] sm:$0xff] %v1723_v29  ;;  %v2000_v34 = vand.u32 127, %v360_v33 }
  0x54   : > { %304 = vst [vmem:[#allocation2 + $0x68] sm:$0xff] %v1723_v29 }
  0x55   : > { %305 = vst [vmem:[#allocation2 + $0x30] sm:$0xff] %v1723_v29  ;;  %vm442_vm1 = vcmp.lt.s32.totalorder %v2000_v34, 15  ;;  %vm402_vm2 = vcmp.lt.s32.totalorder %v2000_v34, 16  ;;  %vm562_vm3 = vcmp.lt.s32.totalorder %v2000_v34, 127  ;;  %vm482_vm4 = vcmp.lt.s32.totalorder %v2000_v34, 1 }
  0x56   : > { %v1923_v42 = vld.sshfl [vmem:[#allocation1 + $0x10] sm:$0xff pattern:$0x75316420]  ;;  %v1925_v43 = vld.sshfl [vmem:[#allocation1 + $0x18] sm:$0xff pattern:$0x75316420] }
  0x57   : > { %541 = vst [vmem:[#allocation1 + $0x10] ss:$2 sm:$0xff] %v1866_v0  ;;  %vm682_vm5 = vcmp.lt.s32.totalorder %v2000_v34, 111  ;;  %vm602_vm6 = vcmp.lt.s32.totalorder %v2000_v34, 113  ;;  %vm642_vm7 = vcmp.lt.s32.totalorder %v2000_v34, 112  ;;  %vm362_vm8 = vcmp.lt.s32.totalorder %v2000_v34, 17 }
  0x58   : > { %v1928_v44 = vld.sshfl [vmem:[#allocation1] sm:$0xff pattern:$0x75316420]  ;;  %v1930_v45 = vld.sshfl [vmem:[#allocation1 + $0x8] sm:$0xff pattern:$0x75316420] }
  0x59   : > { %478 = vrot.lane.b32.xlu2 %v468_v41, %s1718_s30  ;;  %539 = vst [vmem:[#allocation1] ss:$2 sm:$0xff] %v1869_v1 }
  0x5a   : > { %306 = vst [vmem:[#allocation2 + $0x18] sm:$0xff] %v1723_v29 }
  0x5b   : > { %307 = vst [vmem:[#allocation2 + $0x80] sm:$0xff] %v1723_v29 }
  0x5c   : > { %308 = vst [vmem:[#allocation2 + $0x110] sm:$0xff] %v1723_v29 }
  0x5d   : > { %310 = vst [vmem:[#allocation2 + $0x98] sm:$0xff] %v1723_v29 }
  0x5e   : > { %v545_v46 = vld.sshfl [vmem:[#allocation1 + $0x18] sm:$0xff pattern:$0x75316420]  ;;  %v544_v47 = vld.sshfl [vmem:[#allocation1 + $0x10] sm:$0xff pattern:$0x75316420] }
  0x5f   : > { %v549_v48 = vrot.slane %v545_v46, 2  ;;  %581 = vst [vmem:[#allocation1 + $0x10] ss:$2 sm:$0xff] %v1866_v0  ;;  %v548_v52 = vrot.slane %v544_v47, 2 }
  0x60   : > { %v542_v49 = vld.sshfl [vmem:[#allocation1] sm:$0xff pattern:$0x75316420]  ;;  %v543_v50 = vld.sshfl [vmem:[#allocation1 + $0x8] sm:$0xff pattern:$0x75316420] }
  0x61   : > { %560 = vrot.lane.b32.xlu0 %v549_v48, %s1719_s8  ;;  %v546_v51 = vrot.slane %v542_v49, 2  ;;  %579 = vst [vmem:[#allocation1] ss:$2 sm:$0xff] %v1869_v1  ;;  %v547_v56 = vrot.slane %v543_v50, 2  ;;  %v450_v49 = vperm.slane %v1879_v5, 2 }
  0x62   : > { %311 = vst [vmem:[#allocation2 + $0xf8] sm:$0xff] %v1723_v29 }
  0x63   : > { %554 = vrot.lane.b32.xlu2 %v546_v51, %s1719_s8  ;;  %312 = vst [vmem:[#allocation2 + $0x38] sm:$0xff] %v1723_v29  ;;  %v567_v51 = vperm.slane %v1892_v16, 5 }
  0x64   : > { %313 = vst [vmem:[#allocation2 + $0x8] sm:$0xff] %v1723_v29 }
  0x65   : > { %314 = vst [vmem:[#allocation2 + $0x78] sm:$0xff] %v1723_v29 }
  0x66   : > { %v584_v53 = vld.sshfl [vmem:[#allocation1 + $0x10] sm:$0xff pattern:$0x75316420]  ;;  %v585_v54 = vld.sshfl [vmem:[#allocation1 + $0x18] sm:$0xff pattern:$0x75316420] }
  0x67   : > { %v588_v55 = vrot.slane %v584_v53, 2  ;;  %621 = vst [vmem:[#allocation1 + $0x10] ss:$2 sm:$0xff] %v1866_v0  ;;  %v589_v59 = vrot.slane %v585_v54, 2  ;;  %v410_v53 = vperm.slane %v1879_v5, 1 }
  0x68   : > { %v583_v57 = vld.sshfl [vmem:[#allocation1 + $0x8] sm:$0xff pattern:$0x75316420]  ;;  %v582_v58 = vld.sshfl [vmem:[#allocation1] sm:$0xff pattern:$0x75316420] }
  0x69   : > { %558 = vrot.lane.b32.xlu0 %v548_v52, %s1719_s8  ;;  %598 = vrot.lane.b32.xlu1 %v588_v55, %s1720_s9  ;;  %619 = vst [vmem:[#allocation1] ss:$2 sm:$0xff] %v1869_v1  ;;  %v587_v60 = vrot.slane %v583_v57, 2  ;;  %v586_v63 = vrot.slane %v582_v58, 2 }
  0x6a   : > { %315 = vst [vmem:[#allocation2 + $0x20] sm:$0xff] %v1723_v29 }
  0x6b   : > { %556 = vrot.lane.b32.xlu2 %v547_v56, %s1719_s8  ;;  %316 = vst [vmem:[#allocation2 + $0xc8] sm:$0xff] %v1723_v29  ;;  %v490_v56 = vperm.slane %v1879_v5, 3 }
  0x6c   : > { %317 = vst [vmem:[#allocation2 + $0x90] sm:$0xff] %v1723_v29 }
  0x6d   : > { %318 = vst [vmem:[#allocation2 + $0xa0] sm:$0xff] %v1723_v29 }
  0x6e   : > { %v624_v61 = vld.sshfl [vmem:[#allocation1 + $0x10] sm:$0xff pattern:$0x75316420]  ;;  %v625_v62 = vld.sshfl [vmem:[#allocation1 + $0x18] sm:$0xff pattern:$0x75316420] }
  0x6f   : > { %661 = vst [vmem:[#allocation1 + $0x10] ss:$2 sm:$0xff] %v1866_v0  ;;  %v629_v21 = vrot.slane %v625_v62, 2  ;;  %v628_v26 = vrot.slane %v624_v61, 2  ;;  %v489_v61 = vperm.slane %v1884_v7, 3 }
  0x70   : > { %v622_v9 = vld.sshfl [vmem:[#allocation1] sm:$0xff pattern:$0x75316420]  ;;  %v623_v10 = vld.sshfl [vmem:[#allocation1 + $0x8] sm:$0xff pattern:$0x75316420] }
  0x71   : > { %600 = vrot.lane.b32.xlu0 %v589_v59, %s1720_s9  ;;  %596 = vrot.lane.b32.xlu1 %v587_v60, %s1720_s9  ;;  %659 = vst [vmem:[#allocation1] ss:$2 sm:$0xff] %v1869_v1  ;;  %v626_v11 = vrot.slane %v622_v9, 2  ;;  %v627_v31 = vrot.slane %v623_v10, 2 }
  0x72   : > { %319 = vst [vmem:[#allocation2 + $0x70] sm:$0xff] %v1723_v29 }
  0x73   : > { %594 = vrot.lane.b32.xlu2 %v586_v63, %s1720_s9  ;;  %320 = vst [vmem:[#allocation2 + $0x58] sm:$0xff] %v1723_v29  ;;  %v570_v63 = vperm.slane %v1879_v5, 5 }
  0x74   : > { %321 = vst [vmem:[#allocation2 + $0xe0] sm:$0xff] %v1723_v29 }
  0x75   : > { %322 = vst [vmem:[#allocation2 + $0x60] sm:$0xff] %v1723_v29 }
  0x76   : > { %v664_v12 = vld.sshfl [vmem:[#allocation1 + $0x10] sm:$0xff pattern:$0x75316420]  ;;  %v665_v17 = vld.sshfl [vmem:[#allocation1 + $0x18] sm:$0xff pattern:$0x75316420] }
  0x77   : > { %v668_v13 = vrot.slane %v664_v12, 2  ;;  %v669_v23 = vrot.slane %v665_v17, 2  ;;  %323 = vst [vmem:[#allocation2 + $0xa8] sm:$0xff] %v1723_v29  ;;  %v568_v17 = vperm.slane %v1886_v8, 5 }
  0x78   : > { %v662_v14 = vld.sshfl [vmem:[#allocation1] sm:$0xff pattern:$0x75316420]  ;;  %v663_v20 = vld.sshfl [vmem:[#allocation1 + $0x8] sm:$0xff pattern:$0x75316420] }
  0x79   : > { %v666_v15 = vrot.slane %v662_v14, 2  ;;  %634 = vrot.lane.b32.xlu1 %v626_v11, %s1721_s10  ;;  %v667_v24 = vrot.slane %v663_v20, 2  ;;  %324 = vst [vmem:[#allocation2 + $0x88] sm:$0xff] %v1723_v29  ;;  %v569_v20 = vperm.slane %v1884_v7, 5 }
  0x7a   : > { %325 = vst [vmem:[#allocation2 + $0xd8] sm:$0xff] %v1723_v29 }
  0x7b   : > { %674 = vrot.lane.b32.xlu0 %v666_v15, %s1722_s13  ;;  %678 = vrot.lane.b32.xlu2 %v668_v13, %s1722_s13  ;;  %326 = vst [vmem:[#allocation2 + $0xc0] sm:$0xff] %v1723_v29 }
  0x7c   : > { %327 = vst [vmem:[#allocation2 + $0x50] sm:$0xff] %v1723_v29 }
  0x7d   : > { %328 = vst [vmem:[#allocation2 + $0xf0] sm:$0xff] %v1723_v29 }
  0x7e   : > { %329 = vst [vmem:[#allocation2 + $0xb8] sm:$0xff] %v1723_v29 }
  0x7f   : > { %330 = vst [vmem:[#allocation2 + $0x28] sm:$0xff] %v1723_v29 }
  0x80   : > { %331 = vst [vmem:[#allocation2 + $0x100] sm:$0xff] %v1723_v29 }
  0x81   : > { %640 = vrot.lane.b32.xlu1 %v629_v21, %s1721_s10  ;;  %332 = vst [vmem:[#allocation2] sm:$0xff] %v1723_v29 }
  0x82   : > { %333 = vst [vmem:[#allocation2 + $0x40] sm:$0xff] %v1723_v29 }
  0x83   : > { %680 = vrot.lane.b32.xlu0 %v669_v23, %s1722_s13  ;;  %676 = vrot.lane.b32.xlu2 %v667_v24, %s1722_s13  ;;  %334 = vst [vmem:[#allocation2 + $0xe8] sm:$0xff] %v1723_v29  ;;  %v2107_v24 = vld [vmem:[#allocation7 + $0x28] ss:$0 sm:$0xff] }
  0x84   : > { %872 = vst [vmem:[#allocation3 + $0x80] sm:$0xff] %v1723_v29 }
  0x85   : > { %873 = vst [vmem:[#allocation3 + $0xc8] sm:$0xff] %v1723_v29 }
  0x86   : > { %874 = vst [vmem:[#allocation3 + $0xb8] sm:$0xff] %v1723_v29 }
  0x87   : > { %875 = vst [vmem:[#allocation3 + $0x70] sm:$0xff] %v1723_v29 }
  0x88   : > { %876 = vst [vmem:[#allocation3 + $0x98] sm:$0xff] %v1723_v29 }
  0x89   : > { %638 = vrot.lane.b32.xlu1 %v628_v26, %s1721_s10  ;;  %877 = vst [vmem:[#allocation3 + $0xa8] sm:$0xff] %v1723_v29 }
  0x8a   : > { %878 = vst [vmem:[#allocation3 + $0x8] sm:$0xff] %v1723_v29 }
  0x8b   : > { %356 = vrot.lane.b32.xlu0 %v346_v27, %s1724_s25  ;;  %396 = vrot.lane.b32.xlu2 %v387_v28, %s1716_s29  ;;  %879 = vst [vmem:[#allocation3 + $0xe8] sm:$0xff] %v1723_v29 }
  0x8c   : > { %880 = vst [vmem:[#allocation3 + $0xf8] sm:$0xff] %v1723_v29 }
  0x8d   : > { %881 = vst [vmem:[#allocation3 + $0xf0] sm:$0xff] %v1723_v29 }
  0x8e   : > { %882 = vst [vmem:[#allocation3 + $0x30] sm:$0xff] %v1723_v29 }
  0x8f   : > { %883 = vst [vmem:[#allocation3 + $0x60] sm:$0xff] %v1723_v29 }
  0x90   : > { %884 = vst [vmem:[#allocation3 + $0x50] sm:$0xff] %v1723_v29 }
  0x91   : > { %636 = vrot.lane.b32.xlu1 %v627_v31, %s1721_s10  ;;  %885 = vst [vmem:[#allocation3] sm:$0xff] %v1723_v29 }
  0x92   : > { %886 = vst [vmem:[#allocation3 + $0x40] sm:$0xff] %v1723_v29 }
  0x93   : > { %474 = vrot.lane.b32.xlu0 %v466_v2, %s1718_s30  ;;  %434 = vrot.lane.b32.xlu2 %v426_v19, %s1717_s15  ;;  %887 = vst [vmem:[#allocation3 + $0xb0] sm:$0xff] %v1723_v29 }
  0x94   : > { %888 = vst [vmem:[#allocation3 + $0x38] sm:$0xff] %v1723_v29 }
  0x95   : > { %889 = vst [vmem:[#allocation3 + $0xe0] sm:$0xff] %v1723_v29 }
  0x96   : > { %890 = vst [vmem:[#allocation3 + $0x10] sm:$0xff] %v1723_v29 }
  0x97   : > { %891 = vst [vmem:[#allocation3 + $0xd0] sm:$0xff] %v1723_v29 }
  0x98   : > { %892 = vst [vmem:[#allocation3 + $0xc0] sm:$0xff] %v1723_v29 }
  0x99   : > { %358 = vrot.lane.b32.xlu1 %v347_v30, %s1724_s25  ;;  %893 = vst [vmem:[#allocation3 + $0x28] sm:$0xff] %v1723_v29  ;;  %v609_v30 = vperm.slane %v1884_v7, 6 }
  0x9a   : > { %894 = vst [vmem:[#allocation3 + $0x118] sm:$0xff] %v1723_v29 }
  0x9b   : > { %394 = vrot.lane.b32.xlu0 %v386_v32, %s1716_s29  ;;  %895 = vst [vmem:[#allocation3 + $0x100] sm:$0xff] %v1723_v29  ;;  %v610_v32 = vperm.slane %v1879_v5, 6 }
  0x9c   : > { %896 = vst [vmem:[#allocation3 + $0x108] sm:$0xff] %v1723_v29 }
  0x9d   : > { %897 = vst [vmem:[#allocation3 + $0x18] sm:$0xff] %v1723_v29 }
  0x9e   : > { %898 = vst [vmem:[#allocation3 + $0x90] sm:$0xff] %v1723_v29 }
  0x9f   : > { %899 = vst [vmem:[#allocation3 + $0xa0] sm:$0xff] %v1723_v29 }
  0xa0   : > { %900 = vst [vmem:[#allocation3 + $0xd8] sm:$0xff] %v1723_v29 }
  0xa1   : > { %354 = vrot.lane.b32.xlu1 %v345_v3, %s1724_s25  ;;  %901 = vst [vmem:[#allocation3 + $0x48] sm:$0xff] %v1723_v29  ;;  %v607_v3 = vperm.slane %v1892_v16, 6 }
  0xa2   : > { %902 = vst [vmem:[#allocation3 + $0x58] sm:$0xff] %v1723_v29 }
  0xa3   : > { %v439_v18 = vpop.permute.xlu2 %438  ;;  %903 = vst [vmem:[#allocation3 + $0x78] sm:$0xff] %v1723_v29 }
  0xa4   : > { %904 = vst [vmem:[#allocation3 + $0x68] sm:$0xff] %v1723_v29 }
  0xa5   : > { %905 = vst [vmem:[#allocation3 + $0x110] sm:$0xff] %v1723_v29 }
  0xa6   : > { %906 = vst [vmem:[#allocation3 + $0x88] sm:$0xff] %v1723_v29 }
  0xa7   : > { %907 = vst [vmem:[#allocation3 + $0x20] sm:$0xff] %v1723_v29 }
  0xa9   : > { %352 = vrot.lane.b32.xlu1 %v344_v6, %s1724_s25 }
  0xab   : > { %v2009_v4 = vpop.permute.xlu2 %436 }
  0xac   : > { %v444_v36 = vsel %vm442_vm1, %v2009_v4, %v439_v18 }
  0xad   : > { %v453_v37 = vmul.f32 %v449_v35, %v444_v36  ;;  %v409_v36 = vperm.slane %v1884_v7, 1 }
  0xaf   : > { %457 = vst [vmem:[#allocation2 + $0x118] sm:$0x3] %v453_v37 }
  0xb3   : > { %v479_v38 = vpop.permute.xlu2 %478  ;;  %v2026_v39 = vpop.permute.xlu0 %398 }
  0xb4   : > { %v2047_v47 = vpop.permute.xlu1 %400 }
  0xb5   : > { %v403_v55 = vsel %vm402_vm2, %v2026_v39, %v2047_v47 }
  0xb6   : > { %v414_v62 = vmul.f32 %v410_v53, %v403_v55 }
  0xb8   : > { %418 = vst [vmem:[#allocation2 + $0x18] sm:$0x3] %v414_v62  ;;  %v530_v62 = vrot.slane %v1925_v43, 2 }
  0xba   : > { %538 = vst [vmem:[#allocation2 + $0xa0] sm:$0x3] %v530_v62  ;;  %v647_v62 = vperm.slane %v1892_v16, 7 }
  0xbb   : > { %v2038_v41 = vpop.permute.xlu0 %440 }
  0xbc   : > { %v443_v50 = vsel %vm442_vm1, %v439_v18, %v2038_v41  ;;  %v608_v18 = vperm.slane %v1886_v8, 6 }
  0xbd   : > { %v555_v40 = vpop.permute.xlu2 %554  ;;  %v454_v58 = vmul.f32 %v450_v49, %v443_v50 }
  0xbf   : > { %458 = vst [vmem:[#allocation2 + $0x98] sm:$0x3] %v454_v58 }
  0xc3   : > { %v2052_v48 = vpop.permute.xlu0 %480 }
  0xc4   : > { %v483_v59 = vsel %vm482_vm4, %v479_v38, %v2052_v48 }
  0xc5   : > { %v557_v46 = vpop.permute.xlu2 %556  ;;  %v2075_v57 = vpop.permute.xlu1 %476  ;;  %v494_v10 = vmul.f32 %v490_v56, %v483_v59 }
  0xc6   : > { %v565_v52 = vsel %vm562_vm3, %v555_v40, %v557_v46  ;;  %v484_v9 = vsel %vm482_vm4, %v2075_v57, %v479_v38 }
  0xc7   : > { %v571_v60 = vmul.f32 %v567_v51, %v565_v52  ;;  %v493_v13 = vmul.f32 %v489_v61, %v484_v9  ;;  %498 = vst [vmem:[#allocation2 + $0x78] sm:$0x3] %v494_v10  ;;  %v2153_v9 = vld [vmem:[#allocation7 + $0x20] ss:$0 sm:$0xff] }
  0xc9   : > { %575 = vst [vmem:[#allocation2 + $0x70] sm:$0x3] %v571_v60 }
  0xca   : > { %497 = vst [vmem:[#allocation2 + $0x8] sm:$0x3] %v493_v13  ;;  %v529_v13 = vrot.slane %v1923_v42, 2 }
  0xcc   : > { %537 = vst [vmem:[#allocation2 + $0x90] sm:$0x3] %v529_v13  ;;  %v648_v13 = vperm.slane %v1886_v8, 7 }
  0xcd   : > { %v595_v54 = vpop.permute.xlu2 %594 }
  0xd3   : > { %v561_v11 = vpop.permute.xlu0 %560 }
  0xd4   : > { %v566_v12 = vsel %vm562_vm3, %v561_v11, %v555_v40 }
  0xd5   : > { %v574_v14 = vmul.f32 %v570_v63, %v566_v12  ;;  %v2103_v15 = vpop.permute.xlu2 %678  ;;  %v448_v12 = vperm.slane %v1886_v8, 2 }
  0xd7   : > { %578 = vst [vmem:[#allocation2 + $0x60] sm:$0x3] %v574_v14 }
  0xdb   : > { %v559_v21 = vpop.permute.xlu0 %558  ;;  %v599_v23 = vpop.permute.xlu1 %598 }
  0xdc   : > { %v563_v26 = vsel %vm562_vm3, %v559_v21, %v561_v11  ;;  %v564_v27 = vsel %vm562_vm3, %v557_v46, %v559_v21  ;;  %v447_v11 = vperm.slane %v1892_v16, 2 }
  0xdd   : > { %v572_v28 = vmul.f32 %v568_v17, %v564_v27  ;;  %v573_v29 = vmul.f32 %v569_v20, %v563_v26  ;;  %v677_v31 = vpop.permute.xlu2 %676 }
  0xde   : > { %v684_v2 = vsel %vm682_vm5, %v677_v31, %v2103_v15 }
  0xdf   : > { %576 = vst [vmem:[#allocation2 + $0x58] sm:$0x3] %v572_v28  ;;  %v692_v19 = vmul.f32 %v2107_v24, %v684_v2  ;;  %v527_v2 = vrot.slane %v1928_v44, 2 }
  0xe0   : > { %577 = vst [vmem:[#allocation2 + $0xe0] sm:$0x3] %v573_v29  ;;  %v650_v29 = vperm.slane %v1879_v5, 7 }
  0xe1   : > { %696 = vst [vmem:[#allocation2] sm:$0x3] %v692_v19  ;;  %v528_v19 = vrot.slane %v1930_v45, 2 }
  0xe2   : > { %535 = vst [vmem:[#allocation2 + $0x20] sm:$0x3] %v527_v2 }
  0xe3   : > { %v601_v33 = vpop.permute.xlu0 %600  ;;  %v597_v6 = vpop.permute.xlu1 %596  ;;  %536 = vst [vmem:[#allocation2 + $0xc8] sm:$0x3] %v528_v19 }
  0xe4   : > { %v603_v37 = vsel %vm602_vm6, %v599_v23, %v601_v33  ;;  %v606_v38 = vsel %vm602_vm6, %v601_v33, %v595_v54  ;;  %v604_v40 = vsel %vm602_vm6, %v597_v6, %v599_v23  ;;  %v605_v46 = vsel %vm602_vm6, %v595_v54, %v597_v6 }
  0xe5   : > { %v613_v50 = vmul.f32 %v609_v30, %v603_v37  ;;  %v614_v52 = vmul.f32 %v610_v32, %v606_v38  ;;  %v611_v55 = vmul.f32 %v607_v3, %v605_v46  ;;  %v2142_v58 = vpop.permute.xlu2 %396  ;;  %v612_v59 = vmul.f32 %v608_v18, %v604_v40 }
  0xe6   : > { %v404_v60 = vsel %vm402_vm2, %v2142_v58, %v2026_v39 }
  0xe7   : > { %617 = vst [vmem:[#allocation2 + $0xd8] sm:$0x3] %v613_v50  ;;  %v413_v54 = vmul.f32 %v409_v36, %v404_v60  ;;  %v649_v50 = vperm.slane %v1884_v7, 7 }
  0xe8   : > { %618 = vst [vmem:[#allocation2 + $0xc0] sm:$0x3] %v614_v52  ;;  %v733_v28 = vld [vmem:[#allocation2] sm:$0xff] }
  0xe9   : > { %615 = vst [vmem:[#allocation2 + $0xa8] sm:$0x3] %v611_v55  ;;  %773 = vmatpush.msra.mxu1 %v733_v28 }
  0xea   : > { %616 = vst [vmem:[#allocation2 + $0x88] sm:$0x3] %v612_v59 }
  0xeb   : > { %417 = vst [vmem:[#allocation2 + $0x30] sm:$0x3] %v413_v54  ;;  %v635_v10 = vpop.permute.xlu1 %634 }
  0xed   : > { %v675_v39 = vpop.permute.xlu0 %674  ;;  %v435_v14 = vpop.permute.xlu2 %434 }
  0xee   : > { %v685_v21 = vsel %vm682_vm5, %v675_v39, %v677_v31  ;;  %v445_v43 = vsel %vm442_vm1, %v435_v14, %v2009_v4  ;;  %v446_v23 = vsel %vm442_vm1, %v2038_v41, %v435_v14  ;;  %v2173_v4 = vld [vmem:[#allocation7 + $0x30] ss:$0 sm:$0xff]  ;;  %v2175_v41 = vld [vmem:[#allocation7 + $0x38] ss:$0 sm:$0xff] }
  0xef   : > { %v691_v26 = vmul.f32 %v2153_v9, %v685_v21  ;;  %v451_v42 = vmul.f32 %v447_v11, %v446_v23  ;;  %v452_v27 = vmul.f32 %v448_v12, %v445_v43  ;;  %v487_v21 = vperm.slane %v1892_v16, 3  ;;  %v727_v28 = vld [vmem:[#allocation2 + $0xc0] sm:$0xff] }
  0xf0   : > { %v488_v43 = vperm.slane %v1886_v8, 3 }
  0xf1   : > { %695 = vst [vmem:[#allocation2 + $0x100] sm:$0x3] %v691_v26 }
  0xf2   : > { %455 = vst [vmem:[#allocation2 + $0x80] sm:$0x3] %v451_v42 }
  0xf3   : > { %456 = vst [vmem:[#allocation2 + $0x110] sm:$0x3] %v452_v27  ;;  %v641_v31 = vpop.permute.xlu1 %640 }
  0xf4   : > { %v646_v33 = vsel %vm642_vm7, %v641_v31, %v635_v10 }
  0xf5   : > { %v681_v6 = vpop.permute.xlu0 %680  ;;  %v654_v37 = vmul.f32 %v650_v29, %v646_v33 }
  0xf6   : > { %v683_v38 = vsel %vm682_vm5, %v2103_v15, %v681_v6  ;;  %v686_v40 = vsel %vm682_vm5, %v681_v6, %v675_v39 }
  0xf7   : > { %v693_v44 = vmul.f32 %v2173_v4, %v683_v38  ;;  %v694_v45 = vmul.f32 %v2175_v41, %v686_v40  ;;  %658 = vst [vmem:[#allocation2 + $0x28] sm:$0x3] %v654_v37  ;;  %v723_v37 = vld [vmem:[#allocation2 + $0x60] sm:$0xff]  ;;  %v726_v40 = vld [vmem:[#allocation2 + $0xd8] sm:$0xff] }
  0xf8   : > { %v732_v46 = vld [vmem:[#allocation2 + $0x100] sm:$0xff] }
  0xf9   : > { %697 = vst [vmem:[#allocation2 + $0x40] sm:$0x3] %v693_v44  ;;  %753 = vmatpush.msra.mxu0 %v732_v46  ;;  %v719_v38 = vld [vmem:[#allocation2 + $0xa0] sm:$0xff]  ;;  %v1725_v46 = vmov 0  }
  0xfa   : > { %698 = vst [vmem:[#allocation2 + $0xe8] sm:$0x3] %v694_v45  ;;  %v722_v44 = vld [vmem:[#allocation2 + $0xe0] sm:$0xff]  ;;  %v718_v45 = vld [vmem:[#allocation2 + $0x90] sm:$0xff]  ;;  %1543 = vset.pattern.permute.xlu2 %v1725_v46  ;;  %1544 = vset.pattern.permute.xlu0 %v1725_v46 }
  0xfb   : > { %v639_v52 = vpop.permute.xlu1 %638 }
  0xfc   : > { %v643_v55 = vsel %vm642_vm7, %v639_v52, %v641_v31 }
  0xfd   : > { %v2193_v15 = vpop.permute.xlu0 %356  ;;  %v653_v59 = vmul.f32 %v649_v50, %v643_v55 }
  0xfe   : > { %v731_v39 = vld [vmem:[#allocation2 + $0x28] sm:$0xff] }
  0xff   : > { %657 = vst [vmem:[#allocation2 + $0xb8] sm:$0x3] %v653_v59  ;;  %v407_v59 = vperm.slane %v1892_v16, 1 }
 0x100   : > { %v734_v60 = vld [vmem:[#allocation2 + $0x40] sm:$0xff] }
 0x101   : > { %v735_v54 = vld [vmem:[#allocation2 + $0xe8] sm:$0xff]  ;;  %793 = vmatpush.msra.mxu2 %v734_v60  ;;  %v408_v60 = vperm.slane %v1886_v8, 1 }
 0x102   : > { %813 = vmatpush.msra.mxu3 %v735_v54 }
 0x103   : > { %v637_v14 = vpop.permute.xlu1 %636 }
 0x104   : > { %814 = vmatpush.msra.mxu3 %v731_v39  ;;  %v644_v23 = vsel %vm642_vm7, %v637_v14, %v639_v52  ;;  %v645_v26 = vsel %vm642_vm7, %v635_v10, %v637_v14  ;;  %v715_v52 = vld [vmem:[#allocation2 + $0x78] sm:$0xff] }
 0x105   : > { %v651_v42 = vmul.f32 %v647_v62, %v645_v26  ;;  %v652_v27 = vmul.f32 %v648_v13, %v644_v23  ;;  %v475_v31 = vpop.permute.xlu0 %474  ;;  %v711_v14 = vld [vmem:[#allocation2 + $0x98] sm:$0xff] }
 0x106   : > { %815 = vmatpush.msra.mxu3 %v727_v28  ;;  %v485_v2 = vsel %vm482_vm4, %v475_v31, %v2075_v57  ;;  %v486_v19 = vsel %vm482_vm4, %v2052_v48, %v475_v31  ;;  %v730_v33 = vld [vmem:[#allocation2 + $0xb8] sm:$0xff]  ;;  %v370_v48 = vperm.slane %v1879_v5, 0  ;;  %v714_v28 = vld [vmem:[#allocation2 + $0x8] sm:$0xff] }
 0x107   : > { %655 = vst [vmem:[#allocation2 + $0x50] sm:$0x3] %v651_v42  ;;  %v491_v10 = vmul.f32 %v487_v21, %v486_v19  ;;  %v492_v6 = vmul.f32 %v488_v43, %v485_v2  ;;  %794 = vmatpush.msra.mxu2 %v730_v33  ;;  %v736_v57 = vld [vmem:[%s2566_s3] sm:$0xf] }
 0x108   : > { %656 = vst [vmem:[#allocation2 + $0xf0] sm:$0x3] %v652_v27  ;;  %816 = vmatpush.msra.mxu3 %v723_v37  ;;  %739 = vperm.xlu2 %1543, %v736_v57   ;;  %v707_v19 = vld [vmem:[#allocation2 + $0x18] sm:$0xff]  ;;  %v720_v37 = vld [vmem:[#allocation2 + $0x70] sm:$0xff] }
 0x109   : > { %495 = vst [vmem:[#allocation2 + $0xf8] sm:$0x3] %v491_v10  ;;  %795 = vmatpush.msra.mxu2 %v726_v40  ;;  %v710_v10 = vld [vmem:[#allocation2 + $0x118] sm:$0xff]  ;;  %v716_v40 = vld [vmem:[#allocation2 + $0x20] sm:$0xff] }
 0x10a   : > { %496 = vst [vmem:[#allocation2 + $0x38] sm:$0x3] %v492_v6  ;;  %817 = vmatpush.msra.mxu3 %v719_v38  ;;  %v369_v6 = vperm.slane %v1884_v7, 0  ;;  %v706_v38 = vld [vmem:[#allocation2 + $0x30] sm:$0xff] }
 0x10b   : > { %v2224_v55 = vpop.permute.xlu1 %358  ;;  %796 = vmatpush.msra.mxu2 %v722_v44  ;;  %v721_v44 = vld [vmem:[#allocation2 + $0x58] sm:$0xff] }
 0x10c   : > { %818 = vmatpush.msra.mxu3 %v715_v52  ;;  %v363_v54 = vsel %vm362_vm8, %v2193_v15, %v2224_v55 }
 0x10d   : > { %v374_v39 = vmul.f32 %v370_v48, %v363_v54  ;;  %v395_v23 = vpop.permute.xlu0 %394  ;;  %797 = vmatpush.msra.mxu2 %v718_v45  ;;  %v717_v45 = vld [vmem:[#allocation2 + $0xc8] sm:$0xff]  ;;  %v699_v54 = vld [vmem:[%s2565_s2] sm:$0xf] }
 0x10e   : > { %819 = vmatpush.msra.mxu3 %v711_v14  ;;  %v405_v26 = vsel %vm402_vm2, %v395_v23, %v2142_v58  ;;  %v406_v42 = vsel %vm402_vm2, %v2047_v47, %v395_v23  ;;  %v728_v27 = vld [vmem:[#allocation2 + $0x50] sm:$0xff]  ;;  %v724_v58 = vld [vmem:[#allocation2 + $0xa8] sm:$0xff] }
 0x10f   : > { %378 = vst [vmem:[#allocation2 + $0x48] sm:$0x3] %v374_v39  ;;  %v411_v31 = vmul.f32 %v407_v59, %v406_v42  ;;  %v412_v2 = vmul.f32 %v408_v60, %v405_v26  ;;  %754 = vmatpush.msra.mxu0 %v728_v27  ;;  %v729_v33 = vld [vmem:[#allocation2 + $0xf0] sm:$0xff]  ;;  %798 = vmatpush.msra.mxu2 %v714_v28  ;;  %v725_v47 = vld [vmem:[#allocation2 + $0x88] sm:$0xff]  ;;  %v708_v26 = vld [vmem:[#allocation2 + $0x80] sm:$0xff]  ;;  %v367_v27 = vperm.slane %v1892_v16, 0 }
 0x110   : > { %820 = vmatpush.msra.mxu3 %v707_v19  ;;  %774 = vmatpush.msra.mxu1 %v729_v33  ;;  %v712_v39 = vld [vmem:[#allocation2 + $0xf8] sm:$0xff]  ;;  %v368_v28 = vperm.slane %v1886_v8, 0 }
 0x111   : > { %415 = vst [vmem:[#allocation2 + $0x108] sm:$0x3] %v411_v31  ;;  %755 = vmatpush.msra.mxu0 %v724_v58  ;;  %799 = vmatpush.msra.mxu2 %v710_v10  ;;  %v713_v23 = vld [vmem:[#allocation2 + $0x38] sm:$0xff] }
 0x112   : > { %416 = vst [vmem:[#allocation2 + $0x68] sm:$0x3] %v412_v2  ;;  %775 = vmatpush.msra.mxu1 %v725_v47 }
 0x113   : > { %v355_v57 = vpop.permute.xlu1 %354  ;;  %756 = vmatpush.msra.mxu0 %v720_v37  ;;  %800 = vmatpush.msra.mxu2 %v706_v38 }
 0x114   : > { %v364_v46 = vsel %vm362_vm8, %v355_v57, %v2193_v15  ;;  %776 = vmatpush.msra.mxu1 %v721_v44  ;;  %v709_v15 = vld [vmem:[#allocation2 + $0x110] sm:$0xff] }
 0x115   : > { %v373_v52 = vmul.f32 %v369_v6, %v364_v46  ;;  %757 = vmatpush.msra.mxu0 %v716_v40 }
 0x116   : > { %777 = vmatpush.msra.mxu1 %v717_v45  ;;  %v703_v14 = vld [vmem:[#allocation2 + $0x48] sm:$0xff] }
 0x117   : > { %377 = vst [vmem:[#allocation2 + $0x10] sm:$0x3] %v373_v52  ;;  %758 = vmatpush.msra.mxu0 %v712_v39  ;;  %821 = vmatpush.msra.mxu3 %v703_v14 }
 0x118   : > { %778 = vmatpush.msra.mxu1 %v713_v23  ;;  %1460 = vmatmul.msk.f32.vlgmr.msra.gmra.mxu3 %vm742_vm9, %v699_v54  ;;  %v704_v31 = vld [vmem:[#allocation2 + $0x108] sm:$0xff] }
 0x119   : > { %759 = vmatpush.msra.mxu0 %v708_v26  ;;  %v705_v42 = vld [vmem:[#allocation2 + $0x68] sm:$0xff] }
 0x11a   : > { %779 = vmatpush.msra.mxu1 %v709_v15 }
 0x11b   : > { %760 = vmatpush.msra.mxu0 %v704_v31  ;;  %v353_v2 = vpop.permute.xlu1 %352 }
 0x11c   : > { %780 = vmatpush.msra.mxu1 %v705_v42  ;;  %v365_v19 = vsel %vm362_vm8, %v353_v2, %v355_v57  ;;  %v366_v33 = vsel %vm362_vm8, %v2224_v55, %v353_v2 }
 0x11d   : > { %v371_v58 = vmul.f32 %v367_v27, %v366_v33  ;;  %v372_v10 = vmul.f32 %v368_v28, %v365_v19 }
 0x11e   : > { %v702_v47 = vld [vmem:[#allocation2 + $0x10] sm:$0xff] }
 0x11f   : > { %375 = vst [vmem:[#allocation2 + $0xb0] sm:$0x3] %v371_v58  ;;  %801 = vmatpush.msra.mxu2 %v702_v47 }
 0x120   : > { %376 = vst [vmem:[#allocation2 + $0xd0] sm:$0x3] %v372_v10  ;;  %1459 = vmatmul.msk.f32.vlgmr.msra.gmra.mxu2 %vm742_vm9, %v699_v54 }
 0x126   : > { %v700_v37 = vld [vmem:[#allocation2 + $0xb0] sm:$0xff] }
 0x127   : > { %761 = vmatpush.msra.mxu0 %v700_v37  ;;  %v701_v38 = vld [vmem:[#allocation2 + $0xd0] sm:$0xff] }
 0x128   : > { %781 = vmatpush.msra.mxu1 %v701_v38  ;;  %1457 = vmatmul.msk.f32.vlgmr.msra.gmra.mxu0 %vm742_vm9, %v699_v54 }
 0x129   : > { %1458 = vmatmul.msk.f32.vlgmr.msra.gmra.mxu1 %vm742_vm9, %v699_v54 }
 0x162   : > { %v740_v55 = vpop.permute.xlu2 %739 }
 0x19b   : > { %v823_v40 = vpop.f32.mrf.mxu3 }
 0x19c   : > { %v824_v57 = vadd.f32 %v823_v40, %v740_v55 }
 0x19e   : > { %v829_v44 = vmul.f32 0.5, %v824_v57  ;;  %v859_v47 = vrot.slane %v824_v57, 4 }
 0x1a0   : > { %1549 = vtanh.f32 %v829_v44 }
 0x1a3   : > { %v803_v45 = vpop.f32.mrf.mxu2 }
 0x1a4   : > { %v804_v46 = vadd.f32 %v803_v45, %v740_v55 }
 0x1a5   : > { %v763_v52 = vpop.f32.mrf.mxu0 }
 0x1a6   : > { %v1550_v39 = vpop.eup %1549  ;;  %v828_v14 = vmul.f32 0.5, %v804_v46  ;;  %v764_v23 = vadd.f32 %v763_v52, %v740_v55  ;;  %v783_v26 = vpop.f32.mrf.mxu1  ;;  %v861_v44 = vsel %vm509_vm0, %v804_v46, %v859_v47 }
 0x1a7   : > { %v840_v15 = vmul.f32 1.442695, %v1550_v39  ;;  %v784_v42 = vadd.f32 %v783_v26, %v740_v55 }
 0x1a8   : > { %1551 = vtanh.f32 %v828_v14  ;;  %v826_v31 = vmul.f32 0.5, %v764_v23  ;;  %v1462_v14 = vrot.slane %v861_v44, 10 }
 0x1a9   : > { %1553 = vpow2.f32 %v840_v15  ;;  %v827_v2 = vmul.f32 0.5, %v784_v42  ;;  %v858_v45 = vrot.slane %v784_v42, 4 }
 0x1aa   : > { %1555 = vtanh.f32 %v826_v31 }
 0x1ab   : > { %1557 = vtanh.f32 %v827_v2  ;;  %v860_v57 = vsel %vm509_vm0, %v764_v23, %v858_v45 }
 0x1ae   : > { %v1552_v54 = vpop.eup %1551 }
 0x1af   : > { %v1554_v19 = vpop.eup %1553  ;;  %v838_v33 = vmul.f32 1.442695, %v1552_v54 }
 0x1b0   : > { %v1556_v58 = vpop.eup %1555  ;;  %v847_v40 = vrot.slane %v1554_v19, 4  ;;  %v1461_v19 = vrot.slane %v860_v57, 10 }
 0x1b1   : > { %v1558_v10 = vpop.eup %1557  ;;  %1559 = vpow2.f32 %v838_v33  ;;  %v834_v37 = vmul.f32 1.442695, %v1556_v58 }
 0x1b2   : > { %v836_v38 = vmul.f32 1.442695, %v1558_v10 }
 0x1b4   : > { %1561 = vpow2.f32 %v836_v38 }
 0x1b5   : > { %1563 = vpow2.f32 %v834_v37 }
 0x1b7   : > { %v1560_v55 = vpop.eup %1559 }
 0x1b8   : > { %v849_v52 = vsel %vm509_vm0, %v1560_v55, %v847_v40 }
 0x1b9   : > { %v853_v39 = vmul.f32 %v849_v52, %v1866_v0 }
 0x1ba   : > { %v1562_v26 = vpop.eup %1561 }
 0x1bb   : > { %v2271_v15 = vadd.f32 %v1462_v14, %v853_v39  ;;  %v846_v31 = vrot.slane %v1562_v26, 4  ;;  %v1564_v2 = vpop.eup %1563 }
 0x1bd   : > { %912 = vst [vmem:[#allocation1 + $0x10] ss:$2 sm:$0xff] %v2271_v15  ;;  %v848_v46 = vsel %vm509_vm0, %v1564_v2, %v846_v31  ;;  %v1037_v39 = vmul.f32 %v2271_v15, %v1903_v22 }
 0x1be   : > { %v852_v54 = vmul.f32 %v848_v46, %v1869_v1  ;;  %871 = vst [vmem:[%s2279_s12 + $0x8] sm:$0x33] %v2271_v15 }
 0x1c0   : > { %v2283_v42 = vadd.f32 %v1461_v19, %v852_v54 }
 0x1c2   : > { %910 = vst [vmem:[#allocation1] ss:$2 sm:$0xff] %v2283_v42  ;;  %v1036_v31 = vmul.f32 %v2283_v42, %v1906_v25 }
 0x1c3   : > { %870 = vst [vmem:[%s2279_s12] sm:$0x33] %v2283_v42 }
 0x1c4   : > { %v2288_v23 = vld.sshfl [vmem:[#allocation1 + $0x10] sm:$0xff pattern:$0x75316420]  ;;  %v2290_v33 = vld.sshfl [vmem:[#allocation1 + $0x18] sm:$0xff pattern:$0x75316420] }
 0x1c5   : > { %943 = vst [vmem:[#allocation1 + $0x10] ss:$2 sm:$0xff] %v2271_v15 }
 0x1c9   : > { %v2293_v58 = vld.sshfl [vmem:[#allocation1] sm:$0xff pattern:$0x75316420]  ;;  %v2295_v10 = vld.sshfl [vmem:[#allocation1 + $0x8] sm:$0xff pattern:$0x75316420] }
 0x1ca   : > { %941 = vst [vmem:[#allocation1] ss:$2 sm:$0xff] %v2283_v42 }
 0x1cc   : > { %v946_v47 = vld.sshfl [vmem:[#allocation1 + $0x10] sm:$0xff pattern:$0x75316420]  ;;  %v947_v37 = vld.sshfl [vmem:[#allocation1 + $0x18] sm:$0xff pattern:$0x75316420] }
 0x1cd   : > { %956 = vrot.lane.b32.xlu0 %v946_v47, %s1716_s29  ;;  %974 = vst [vmem:[#allocation1 + $0x10] ss:$2 sm:$0xff] %v2271_v15  ;;  %958 = vrot.lane.b32.xlu1 %v947_v37, %s1716_s29 }
 0x1d1   : > { %v2301_v38 = vld.sshfl [vmem:[#allocation1] sm:$0xff pattern:$0x75316420]  ;;  %v2303_v40 = vld.sshfl [vmem:[#allocation1 + $0x8] sm:$0xff pattern:$0x75316420] }
 0x1d2   : > { %972 = vst [vmem:[#allocation1] ss:$2 sm:$0xff] %v2283_v42 }
 0x1d4   : > { %v977_v44 = vld.sshfl [vmem:[#allocation1 + $0x10] sm:$0xff pattern:$0x75316420]  ;;  %v978_v55 = vld.sshfl [vmem:[#allocation1 + $0x18] sm:$0xff pattern:$0x75316420] }
 0x1d5   : > { %989 = vrot.lane.b32.xlu0 %v978_v55, %s1717_s15  ;;  %1005 = vst [vmem:[#allocation1 + $0x10] ss:$2 sm:$0xff] %v2271_v15 }
 0x1d9   : > { %v976_v45 = vld.sshfl [vmem:[#allocation1 + $0x8] sm:$0xff pattern:$0x75316420]  ;;  %v2308_v52 = vld.sshfl [vmem:[#allocation1] sm:$0xff pattern:$0x75316420] }
 0x1da   : > { %985 = vrot.lane.b32.xlu2 %v976_v45, %s1717_s15  ;;  %1003 = vst [vmem:[#allocation1] ss:$2 sm:$0xff] %v2283_v42 }
 0x1dc   : > { %v1009_v14 = vld.sshfl [vmem:[#allocation1 + $0x18] sm:$0xff pattern:$0x75316420]  ;;  %v1008_v26 = vld.sshfl [vmem:[#allocation1 + $0x10] sm:$0xff pattern:$0x75316420] }
 0x1dd   : > { %1020 = vrot.lane.b32.xlu0 %v1009_v14, %s1718_s30  ;;  %1042 = vst [vmem:[#allocation1 + $0x10] ss:$2 sm:$0xff] %v1037_v39 }
 0x1e1   : > { %v1006_v57 = vld.sshfl [vmem:[#allocation1] sm:$0xff pattern:$0x75316420]  ;;  %v1007_v2 = vld.sshfl [vmem:[#allocation1 + $0x8] sm:$0xff pattern:$0x75316420] }
 0x1e2   : > { %987 = vrot.lane.b32.xlu2 %v977_v44, %s1717_s15  ;;  %1016 = vrot.lane.b32.xlu1 %v1007_v2, %s1718_s30  ;;  %1040 = vst [vmem:[#allocation1] ss:$2 sm:$0xff] %v1036_v31 }
 0x1e4   : > { %v1045_v46 = vld.sshfl [vmem:[#allocation1 + $0x10] sm:$0xff pattern:$0x75316420]  ;;  %v1046_v54 = vld.sshfl [vmem:[#allocation1 + $0x18] sm:$0xff pattern:$0x75316420] }
 0x1e5   : > { %1057 = vst [vmem:[#allocation1 + $0x10] ss:$2 sm:$0xff] %v2271_v15 }
 0x1e6   : > { %1053 = vst [vmem:[#allocation3 + $0x10] sm:$0x3] %v1045_v46 }
 0x1e7   : > { %1054 = vst [vmem:[#allocation3 + $0xd0] sm:$0x3] %v1046_v54 }
 0x1e9   : > { %v1043_v22 = vld.sshfl [vmem:[#allocation1] sm:$0xff pattern:$0x75316420]  ;;  %v1044_v19 = vld.sshfl [vmem:[#allocation1 + $0x8] sm:$0xff pattern:$0x75316420] }
 0x1ea   : > { %1018 = vrot.lane.b32.xlu2 %v1008_v26, %s1718_s30  ;;  %1055 = vst [vmem:[#allocation1] ss:$2 sm:$0xff] %v2283_v42 }
 0x1eb   : > { %1051 = vst [vmem:[#allocation3 + $0x38] sm:$0x3] %v1043_v22 }
 0x1ec   : > { %v1061_v25 = vld.sshfl [vmem:[#allocation1 + $0x18] sm:$0xff pattern:$0x75316420]  ;;  %1052 = vst [vmem:[#allocation3 + $0xe0] sm:$0x3] %v1044_v19 }
 0x1ed   : > { %1072 = vrot.lane.b32.xlu0 %v1061_v25, %s1719_s8  ;;  %v1060_v47 = vld.sshfl [vmem:[#allocation1 + $0x10] sm:$0xff pattern:$0x75316420] }
 0x1ee   : > { %1088 = vst [vmem:[#allocation1 + $0x10] ss:$2 sm:$0xff] %v2271_v15 }
 0x1f1   : > { %v1058_v37 = vld.sshfl [vmem:[#allocation1] sm:$0xff pattern:$0x75316420]  ;;  %v1059_v44 = vld.sshfl [vmem:[#allocation1 + $0x8] sm:$0xff pattern:$0x75316420] }
 0x1f2   : > { %1066 = vrot.lane.b32.xlu2 %v1058_v37, %s1719_s8  ;;  %1086 = vst [vmem:[#allocation1] ss:$2 sm:$0xff] %v2283_v42 }
 0x1f5   : > { %1070 = vrot.lane.b32.xlu0 %v1060_v47, %s1719_s8  ;;  %v1092_v55 = vld.sshfl [vmem:[#allocation1 + $0x18] sm:$0xff pattern:$0x75316420]  ;;  %v1091_v45 = vld.sshfl [vmem:[#allocation1 + $0x10] sm:$0xff pattern:$0x75316420] }
 0x1f6   : > { %1119 = vst [vmem:[#allocation1 + $0x10] ss:$2 sm:$0xff] %v2271_v15 }
 0x1f9   : > { %v1090_v39 = vld.sshfl [vmem:[#allocation1 + $0x8] sm:$0xff pattern:$0x75316420]  ;;  %v1089_v14 = vld.sshfl [vmem:[#allocation1] sm:$0xff pattern:$0x75316420] }
 0x1fa   : > { %1068 = vrot.lane.b32.xlu2 %v1059_v44, %s1719_s8  ;;  %1099 = vrot.lane.b32.xlu1 %v1090_v39, %s1720_s9  ;;  %1117 = vst [vmem:[#allocation1] ss:$2 sm:$0xff] %v2283_v42  ;;  %s1661_s8 = scalar_lea.hbm %s2569_s6, 32 }
 0x1fd   : > { %1103 = vrot.lane.b32.xlu0 %v1092_v55, %s1720_s9  ;;  %v1123_v26 = vld.sshfl [vmem:[#allocation1 + $0x18] sm:$0xff pattern:$0x75316420]  ;;  %v1122_v31 = vld.sshfl [vmem:[#allocation1 + $0x10] sm:$0xff pattern:$0x75316420] }
 0x1fe   : > { %1150 = vst [vmem:[#allocation1 + $0x10] ss:$2 sm:$0xff] %v2271_v15 }
 0x201   : > { %v1121_v2 = vld.sshfl [vmem:[#allocation1 + $0x8] sm:$0xff pattern:$0x75316420]  ;;  %v1120_v46 = vld.sshfl [vmem:[#allocation1] sm:$0xff pattern:$0x75316420] }
 0x202   : > { %1101 = vrot.lane.b32.xlu1 %v1091_v45, %s1720_s9  ;;  %1097 = vrot.lane.b32.xlu2 %v1089_v14, %s1720_s9  ;;  %1148 = vst [vmem:[#allocation1] ss:$2 sm:$0xff] %v2283_v42 }
 0x205   : > { %1134 = vrot.lane.b32.xlu0 %v1123_v26, %s1721_s10  ;;  %v1154_v15 = vld.sshfl [vmem:[#allocation1 + $0x18] sm:$0xff pattern:$0x75316420]  ;;  %v1153_v42 = vld.sshfl [vmem:[#allocation1 + $0x10] sm:$0xff pattern:$0x75316420] }
 0x209   : > { %v1151_v54 = vld.sshfl [vmem:[#allocation1] sm:$0xff pattern:$0x75316420]  ;;  %v1152_v22 = vld.sshfl [vmem:[#allocation1 + $0x8] sm:$0xff pattern:$0x75316420] }
 0x20a   : > { %1130 = vrot.lane.b32.xlu1 %v1121_v2, %s1721_s10  ;;  %1128 = vrot.lane.b32.xlu2 %v1120_v46, %s1721_s10 }
 0x20d   : > { %1159 = vrot.lane.b32.xlu0 %v1151_v54, %s1722_s13 }
 0x212   : > { %1132 = vrot.lane.b32.xlu1 %v1122_v31, %s1721_s10  ;;  %1161 = vrot.lane.b32.xlu2 %v1152_v22, %s1722_s13 }
 0x215   : > { %925 = vrot.lane.b32.xlu0 %v2288_v23, %s1724_s25  ;;  %v1216_v23 = vld [vmem:[%s2568_s5] sm:$0xf] }
 0x21a   : > { %1165 = vrot.lane.b32.xlu1 %v1154_v15, %s1722_s13  ;;  %954 = vrot.lane.b32.xlu2 %v2303_v40, %s1716_s29 }
 0x21d   : > { %1014 = vrot.lane.b32.xlu0 %v1006_v57, %s1718_s30  ;;  %s1473_s30 = sshll.u32 %s1785_s28, 4  ;;  %s1363_s28 = sshll.u32 %s2279_s12, 4  ;;  %s1364_s28 = int_to_ptr.vmem [resolvable:$true] %s1363_s28 }
 0x222   : > { %1163 = vrot.lane.b32.xlu1 %v1153_v42, %s1722_s13  ;;  %983 = vrot.lane.b32.xlu2 %v2308_v52, %s1717_s15  ;;  %s1361_s13 = scalar_lea.hbm %s2569_s6, %s1473_s30 }
 0x225   : > { %952 = vrot.lane.b32.xlu0 %v2301_v38, %s1716_s29 }
 0x22a   : > { %927 = vrot.lane.b32.xlu1 %v2290_v33, %s1724_s25  ;;  %1219 = vperm.xlu2 %1543, %v1216_v23  }
 0x232   : > { %923 = vrot.lane.b32.xlu1 %v2295_v10, %s1724_s25 }
 0x234   : > { %v2360_v40 = vpop.permute.xlu2 %985 }
 0x23a   : > { %921 = vrot.lane.b32.xlu1 %v2293_v58, %s1724_s25  ;;  %s1365_s25 = sshll.u32 %s1361_s13, 4  ;;  %s1366_s25 = int_to_ptr.hbm [resolvable:$true] %s1365_s25 }
 0x23b   : > { %s1655_s26 = sshra.s32 %s1366_s25, 4  ;;  %s1656_s26 = int_to_ptr.hbm [resolvable:$true] %s1655_s26 }
 0x23c   : > { %v988_v52 = vpop.permute.xlu2 %987  ;;  %s1657_s27 = scalar_lea.hbm %s1656_s26, 16  ;;  %p1662_p12 = scmp.lt.s32.totalorder %s1656_s26, %s2569_s6 }
 0x23d   : > { %v992_v38 = vsel %vm442_vm1, %v2360_v40, %v988_v52  ;;  %p1658_p1 = scmp.ne.s32.totalorder %s1656_s26, %s1657_s27  ;;  %p1663_p8 = scmp.lt.s32.totalorder %s1661_s8, %s1657_s27 }
 0x23e   : > { %v997_v57 = vmul.f32 %v992_v38, %v449_v35 }
 0x23f   : > { %v957_v19 = vpop.permute.xlu0 %956  ;;  %v2369_v25 = vpop.permute.xlu1 %958  ;;  %p1659_p3 = pnand %p1658_p1, %p1821_p13  ;;  %p1664_p7 = por %p1663_p8, %p1662_p12 }
 0x240   : > { %1001 = vst [vmem:[#allocation3 + $0x30] sm:$0x3] %v997_v57  ;;  %v960_v33 = vsel %vm402_vm2, %v957_v19, %v2369_v25 }
 0x241   : > { %v967_v10 = vmul.f32 %v960_v33, %v410_v53  ;;  %p1660_p5 = pneg %p1659_p3 }
 0x243   : > { %971 = vst [vmem:[#allocation3 + $0xe8] sm:$0x3] %v967_v10  ;;  %p1665_p9 = pnand %p1664_p7, %p1660_p5 }
 0x244   : > { %v1019_v58 = vpop.permute.xlu2 %1018 }
 0x247   : > { %v990_v47 = vpop.permute.xlu0 %989 }
 0x248   : > { %v991_v37 = vsel %vm442_vm1, %v988_v52, %v990_v47 }
 0x249   : > { %v998_v35 = vmul.f32 %v991_v37, %v450_v49 }
 0x24b   : > { %1002 = vst [vmem:[#allocation3 + $0x60] sm:$0x3] %v998_v35 }
 0x24c   : > { %v1067_v44 = vpop.permute.xlu2 %1066 }
 0x24f   : > { %v2380_v55 = vpop.permute.xlu0 %1020 }
 0x250   : > { %v1022_v45 = vsel %vm482_vm4, %v1019_v58, %v2380_v55 }
 0x251   : > { %v1029_v53 = vmul.f32 %v1022_v45, %v490_v56 }
 0x253   : > { %1033 = vst [vmem:[#allocation3 + $0xb0] sm:$0x3] %v1029_v53 }
 0x254   : > { %v1069_v39 = vpop.permute.xlu2 %1068  ;;  %v2387_v14 = vpop.permute.xlu1 %1016 }
 0x255   : > { %v1076_v26 = vsel %vm562_vm3, %v1067_v44, %v1069_v39  ;;  %v1023_v49 = vsel %vm482_vm4, %v2387_v14, %v1019_v58 }
 0x256   : > { %v1078_v31 = vmul.f32 %v1076_v26, %v567_v51  ;;  %v1028_v2 = vmul.f32 %v1023_v49, %v489_v61 }
 0x258   : > { %1082 = vst [vmem:[#allocation3 + $0xc0] sm:$0x3] %v1078_v31 }
 0x259   : > { %1032 = vst [vmem:[#allocation3 + $0x40] sm:$0x3] %v1028_v2 }
 0x25c   : > { %v1098_v56 = vpop.permute.xlu2 %1097 }
 0x25f   : > { %v1073_v46 = vpop.permute.xlu0 %1072 }
 0x260   : > { %v1077_v54 = vsel %vm562_vm3, %v1073_v46, %v1067_v44  ;;  %v1194_v7 = vld [vmem:[#allocation3 + $0x40] sm:$0xff] }
 0x261   : > { %v1081_v22 = vmul.f32 %v1077_v54, %v570_v63 }
 0x263   : > { %1085 = vst [vmem:[#allocation3 + $0x100] sm:$0x3] %v1081_v22 }
 0x264   : > { %v1129_v15 = vpop.permute.xlu2 %1128 }
 0x267   : > { %v1071_v42 = vpop.permute.xlu0 %1070 }
 0x268   : > { %v1074_v23 = vsel %vm562_vm3, %v1071_v42, %v1073_v46  ;;  %v1075_v51 = vsel %vm562_vm3, %v1069_v39, %v1071_v42 }
 0x269   : > { %v1079_v61 = vmul.f32 %v1075_v51, %v568_v17  ;;  %v1080_v52 = vmul.f32 %v1074_v23, %v569_v20 }
 0x26b   : > { %1083 = vst [vmem:[#allocation3 + $0x28] sm:$0x3] %v1079_v61 }
 0x26c   : > { %1084 = vst [vmem:[#allocation3 + $0x118] sm:$0x3] %v1080_v52  ;;  %v2410_v38 = vpop.permute.xlu2 %1161  ;;  %v1100_v63 = vpop.permute.xlu1 %1099 }
 0x26d   : > { %v1107_v57 = vsel %vm602_vm6, %v1098_v56, %v1100_v63 }
 0x26e   : > { %v1109_v33 = vmul.f32 %v1107_v57, %v607_v3  ;;  %v1200_v57 = vld [vmem:[#allocation3 + $0xc0] sm:$0xff] }
 0x26f   : > { %v1104_v10 = vpop.permute.xlu0 %1103 }
 0x270   : > { %1113 = vst [vmem:[#allocation3 + $0x108] sm:$0x3] %v1109_v33  ;;  %v1108_v58 = vsel %vm602_vm6, %v1104_v10, %v1098_v56 }
 0x271   : > { %v1112_v17 = vmul.f32 %v1108_v58, %v610_v32 }
 0x273   : > { %1116 = vst [vmem:[#allocation3 + $0xa0] sm:$0x3] %v1112_v17 }
 0x274   : > { %v2420_v20 = vpop.permute.xlu2 %954  ;;  %v1102_v37 = vpop.permute.xlu1 %1101 }
 0x275   : > { %v961_v35 = vsel %vm402_vm2, %v2420_v20, %v957_v19  ;;  %v1105_v44 = vsel %vm602_vm6, %v1102_v37, %v1104_v10  ;;  %v1106_v3 = vsel %vm602_vm6, %v1100_v63, %v1102_v37 }
 0x276   : > { %v966_v45 = vmul.f32 %v961_v35, %v409_v36  ;;  %v1110_v32 = vmul.f32 %v1106_v3, %v608_v18  ;;  %v1111_v53 = vmul.f32 %v1105_v44, %v609_v30 }
 0x277   : > { %v1135_v39 = vpop.permute.xlu0 %1134  ;;  %v1204_v52 = vld [vmem:[#allocation3 + $0x108] sm:$0xff] }
 0x278   : > { %970 = vst [vmem:[#allocation3 + $0x8] sm:$0x3] %v966_v45  ;;  %v1139_v19 = vsel %vm642_vm7, %v1135_v39, %v1129_v15 }
 0x279   : > { %1114 = vst [vmem:[#allocation3 + $0x18] sm:$0x3] %v1110_v32  ;;  %v1143_v26 = vmul.f32 %v1139_v19, %v650_v29 }
 0x27a   : > { %1115 = vst [vmem:[#allocation3 + $0x90] sm:$0x3] %v1111_v53  ;;  %v1207_v45 = vld [vmem:[#allocation3 + $0xa0] sm:$0xff] }
 0x27b   : > { %1147 = vst [vmem:[#allocation3 + $0x78] sm:$0x3] %v1143_v26  ;;  %v1203_v53 = vld [vmem:[#allocation3 + $0x100] sm:$0xff] }
 0x27c   : > { %v984_v49 = vpop.permute.xlu2 %983  ;;  %v1131_v31 = vpop.permute.xlu1 %1130 }
 0x27d   : > { %v993_v18 = vsel %vm442_vm1, %v984_v49, %v2360_v40  ;;  %v994_v30 = vsel %vm442_vm1, %v990_v47, %v984_v49  ;;  %v1138_v36 = vsel %vm642_vm7, %v1129_v15, %v1131_v31  ;;  %v1195_v49 = vld [vmem:[#allocation3 + $0xb0] sm:$0xff] }
 0x27e   : > { %v995_v2 = vmul.f32 %v994_v30, %v447_v11  ;;  %v996_v29 = vmul.f32 %v993_v18, %v448_v12  ;;  %v1140_v56 = vmul.f32 %v1138_v36, %v647_v62  ;;  %v1191_v36 = vld [vmem:[#allocation3 + $0x60] sm:$0xff] }
 0x27f   : > { %v1160_v46 = vpop.permute.xlu0 %1159 }
 0x280   : > { %999 = vst [vmem:[#allocation3 + $0xf8] sm:$0x3] %v995_v2  ;;  %v1169_v40 = vsel %vm682_vm5, %v1160_v46, %v2410_v38  ;;  %v1205_v30 = vld [vmem:[#allocation3 + $0x18] sm:$0xff] }
 0x281   : > { %1000 = vst [vmem:[#allocation3 + $0xf0] sm:$0x3] %v996_v29  ;;  %v1171_v47 = vmul.f32 %v2153_v9, %v1169_v40  ;;  %v1206_v5 = vld [vmem:[#allocation3 + $0x90] sm:$0xff]  ;;  %v1201_v29 = vld [vmem:[#allocation3 + $0x28] sm:$0xff]  ;;  %v1202_v40 = vld [vmem:[#allocation3 + $0x118] sm:$0xff] }
 0x282   : > { %1144 = vst [vmem:[#allocation3 + $0xd8] sm:$0x3] %v1140_v56  ;;  %v1187_v56 = vld [vmem:[#allocation3 + $0xe8] sm:$0xff] }
 0x283   : > { %1175 = vst [vmem:[#allocation3 + $0x68] sm:$0x3] %v1171_v47  ;;  %v1179_v47 = vld [vmem:[%s2567_s4] sm:$0xf] }
 0x284   : > { %v1133_v54 = vpop.permute.xlu1 %1132  ;;  %v1220_v16 = vpop.permute.xlu2 %1219 }
 0x285   : > { %v1136_v11 = vsel %vm642_vm7, %v1133_v54, %v1135_v39  ;;  %v1137_v12 = vsel %vm642_vm7, %v1131_v31, %v1133_v54  ;;  %v1199_v39 = vld [vmem:[#allocation3 + $0xd0] sm:$0xff]  ;;  %v1197_v54 = vld [vmem:[#allocation3 + $0xe0] sm:$0xff] }
 0x286   : > { %v1141_v62 = vmul.f32 %v1137_v12, %v648_v13  ;;  %v1142_v22 = vmul.f32 %v1136_v11, %v649_v50  ;;  %v1198_v12 = vld [vmem:[#allocation3 + $0x10] sm:$0xff] }
 0x287   : > { %v2464_v15 = vpop.permute.xlu0 %925  ;;  %v1188_v32 = vld [vmem:[#allocation3 + $0xf8] sm:$0xff] }
 0x288   : > { %1145 = vst [vmem:[#allocation3 + $0x48] sm:$0x3] %v1141_v62 }
 0x289   : > { %1146 = vst [vmem:[#allocation3 + $0x58] sm:$0x3] %v1142_v22  ;;  %v1208_v23 = vld [vmem:[#allocation3 + $0xd8] sm:$0xff]  ;;  %v1190_v22 = vld [vmem:[#allocation3 + $0x30] sm:$0xff] }
 0x28a   : > { %v1212_v9 = vld [vmem:[#allocation3 + $0x68] sm:$0xff] }
 0x28b   : > { %1232 = vmatpush.msrb.mxu0 %v1212_v9 }
 0x28c   : > { %v1166_v42 = vpop.permute.xlu1 %1165 }
 0x28d   : > { %v1170_v51 = vsel %vm682_vm5, %v1166_v42, %v1160_v46  ;;  %1233 = vmatpush.msrb.mxu0 %v1208_v23 }
 0x28e   : > { %v1174_v61 = vmul.f32 %v2175_v41, %v1170_v51  ;;  %v1196_v41 = vld [vmem:[#allocation3 + $0x38] sm:$0xff] }
 0x28f   : > { %v1015_v63 = vpop.permute.xlu0 %1014  ;;  %1234 = vmatpush.msrb.mxu0 %v1204_v52  ;;  %v1209_v26 = vld [vmem:[#allocation3 + $0x48] sm:$0xff] }
 0x290   : > { %1178 = vst [vmem:[#allocation3 + $0x20] sm:$0x3] %v1174_v61  ;;  %v1024_v50 = vsel %vm482_vm4, %v1015_v63, %v2387_v14  ;;  %v1025_v13 = vsel %vm482_vm4, %v2380_v55, %v1015_v63  ;;  %v1210_v31 = vld [vmem:[#allocation3 + $0x58] sm:$0xff]  ;;  %v1186_v52 = vld [vmem:[#allocation3 + $0x8] sm:$0xff] }
 0x291   : > { %v1026_v33 = vmul.f32 %v1025_v13, %v487_v21  ;;  %v1027_v10 = vmul.f32 %v1024_v50, %v488_v43  ;;  %1235 = vmatpush.msrb.mxu0 %v1200_v57 }
 0x293   : > { %1030 = vst [vmem:[#allocation3 + $0x50] sm:$0x3] %v1026_v33  ;;  %1236 = vmatpush.msrb.mxu0 %v1196_v41 }
 0x294   : > { %1031 = vst [vmem:[#allocation3] sm:$0x3] %v1027_v10  ;;  %v1164_v58 = vpop.permute.xlu1 %1163 }
 0x295   : > { %v1167_v14 = vsel %vm682_vm5, %v1164_v58, %v1166_v42  ;;  %v1168_v55 = vsel %vm682_vm5, %v2410_v38, %v1164_v58 }
 0x296   : > { %v1172_v17 = vmul.f32 %v2107_v24, %v1168_v55  ;;  %v1173_v21 = vmul.f32 %v2173_v4, %v1167_v14  ;;  %v1211_v4 = vld [vmem:[#allocation3 + $0x78] sm:$0xff] }
 0x297   : > { %v953_v37 = vpop.permute.xlu0 %952  ;;  %v1215_v35 = vld [vmem:[#allocation3 + $0x20] sm:$0xff] }
 0x298   : > { %1176 = vst [vmem:[#allocation3 + $0x110] sm:$0x3] %v1172_v17  ;;  %v962_v43 = vsel %vm402_vm2, %v953_v37, %v2420_v20  ;;  %v963_v44 = vsel %vm402_vm2, %v2369_v25, %v953_v37  ;;  %1292 = vmatpush.msrb.mxu3 %v1215_v35 }
 0x299   : > { %1177 = vst [vmem:[#allocation3 + $0x88] sm:$0x3] %v1173_v21  ;;  %v964_v38 = vmul.f32 %v963_v44, %v407_v59  ;;  %v965_v24 = vmul.f32 %v962_v43, %v408_v60 }
 0x29a   : > { %1293 = vmatpush.msrb.mxu3 %v1211_v4  ;;  %v1192_v3 = vld [vmem:[#allocation3 + $0x50] sm:$0xff] }
 0x29b   : > { %968 = vst [vmem:[#allocation3 + $0x98] sm:$0x3] %v964_v38  ;;  %1237 = vmatpush.msrb.mxu0 %v1192_v3  ;;  %v1193_v62 = vld [vmem:[#allocation3] sm:$0xff] }
 0x29c   : > { %969 = vst [vmem:[#allocation3 + $0xa8] sm:$0x3] %v965_v24  ;;  %1294 = vmatpush.msrb.mxu3 %v1207_v45  ;;  %v928_v20 = vpop.permute.xlu1 %927 }
 0x29d   : > { %v929_v25 = vsel %vm362_vm8, %v2464_v15, %v928_v20  ;;  %1238 = vmatpush.msrb.mxu0 %v1188_v32 }
 0x29e   : > { %v936_v59 = vmul.f32 %v929_v25, %v370_v48  ;;  %1295 = vmatpush.msrb.mxu3 %v1203_v53 }
 0x29f   : > { %v1213_v60 = vld [vmem:[#allocation3 + $0x110] sm:$0xff] }
 0x2a0   : > { %940 = vst [vmem:[#allocation3 + $0x70] sm:$0x3] %v936_v59  ;;  %1252 = vmatpush.msrb.mxu1 %v1213_v60  ;;  %v1214_v19 = vld [vmem:[#allocation3 + $0x88] sm:$0xff]  ;;  %1296 = vmatpush.msrb.mxu3 %v1199_v39 }
 0x2a1   : > { %1272 = vmatpush.msrb.mxu2 %v1214_v19 }
 0x2a2   : > { %1253 = vmatpush.msrb.mxu1 %v1209_v26  ;;  %1297 = vmatpush.msrb.mxu3 %v1195_v49  ;;  %v1184_v18 = vld [vmem:[#allocation3 + $0x98] sm:$0xff] }
 0x2a3   : > { %1273 = vmatpush.msrb.mxu2 %v1210_v31  ;;  %1239 = vmatpush.msrb.mxu0 %v1184_v18  ;;  %v1185_v23 = vld [vmem:[#allocation3 + $0xa8] sm:$0xff] }
 0x2a4   : > { %1254 = vmatpush.msrb.mxu1 %v1205_v30  ;;  %1298 = vmatpush.msrb.mxu3 %v1191_v36  ;;  %v924_v48 = vpop.permute.xlu1 %923 }
 0x2a5   : > { %1274 = vmatpush.msrb.mxu2 %v1206_v5  ;;  %v930_v2 = vsel %vm362_vm8, %v924_v48, %v2464_v15 }
 0x2a6   : > { %v935_v46 = vmul.f32 %v930_v2, %v369_v6  ;;  %1255 = vmatpush.msrb.mxu1 %v1201_v29  ;;  %1299 = vmatpush.msrb.mxu3 %v1187_v56  ;;  %v1189_v6 = vld [vmem:[#allocation3 + $0xf0] sm:$0xff] }
 0x2a7   : > { %1275 = vmatpush.msrb.mxu2 %v1202_v40  ;;  %v1183_v11 = vld [vmem:[#allocation3 + $0x70] sm:$0xff] }
 0x2a8   : > { %939 = vst [vmem:[#allocation3 + $0xb8] sm:$0x3] %v935_v46  ;;  %1256 = vmatpush.msrb.mxu1 %v1197_v54  ;;  %1300 = vmatpush.msrb.mxu3 %v1183_v11 }
 0x2a9   : > { %1276 = vmatpush.msrb.mxu2 %v1198_v12  ;;  %1466 = vmatmul.msk.f32.vlgmr.msrb.gmra.mxu3 %vm742_vm9, %v1179_v47 }
 0x2aa   : > { %1257 = vmatpush.msrb.mxu1 %v1193_v62 }
 0x2ab   : > { %1277 = vmatpush.msrb.mxu2 %v1194_v7 }
 0x2ac   : > { %1258 = vmatpush.msrb.mxu1 %v1189_v6  ;;  %v922_v15 = vpop.permute.xlu1 %921 }
 0x2ad   : > { %1278 = vmatpush.msrb.mxu2 %v1190_v22  ;;  %v931_v9 = vsel %vm362_vm8, %v922_v15, %v924_v48  ;;  %v932_v42 = vsel %vm362_vm8, %v928_v20, %v922_v15 }
 0x2ae   : > { %v933_v51 = vmul.f32 %v932_v42, %v367_v27  ;;  %v934_v61 = vmul.f32 %v931_v9, %v368_v28  ;;  %1259 = vmatpush.msrb.mxu1 %v1185_v23 }
 0x2af   : > { %1279 = vmatpush.msrb.mxu2 %v1186_v52  ;;  %v1182_v63 = vld [vmem:[#allocation3 + $0xb8] sm:$0xff] }
 0x2b0   : > { %937 = vst [vmem:[#allocation3 + $0x80] sm:$0x3] %v933_v51 }
 0x2b1   : > { %938 = vst [vmem:[#allocation3 + $0xc8] sm:$0x3] %v934_v61  ;;  %1280 = vmatpush.msrb.mxu2 %v1182_v63 }
 0x2b2   : > { %1465 = vmatmul.msk.f32.vlgmr.msrb.gmra.mxu2 %vm742_vm9, %v1179_v47 }
 0x2b7   : > { %v1180_v50 = vld [vmem:[#allocation3 + $0x80] sm:$0xff] }
 0x2b8   : > { %1240 = vmatpush.msrb.mxu0 %v1180_v50  ;;  %v1181_v34 = vld [vmem:[#allocation3 + $0xc8] sm:$0xff] }
 0x2b9   : > { %1260 = vmatpush.msrb.mxu1 %v1181_v34  ;;  %1463 = vmatmul.msk.f32.vlgmr.msrb.gmra.mxu0 %vm742_vm9, %v1179_v47 }
 0x2ba   : > { %1464 = vmatmul.msk.f32.vlgmr.msrb.gmra.mxu1 %vm742_vm9, %v1179_v47 }
 0x32c   : > { %v1302_v8 = vpop.f32.mrf.mxu3 }
 0x32d   : > { %v1303_v27 = vadd.f32 %v1302_v8, %v1220_v16 }
 0x32f   : > { %v1308_v28 = vmul.f32 0.5, %v1303_v27  ;;  %v1338_v45 = vrot.slane %v1303_v27, 4 }
 0x331   : > { %1565 = vtanh.f32 %v1308_v28 }
 0x335   : > { %v1282_v13 = vpop.f32.mrf.mxu2 }
 0x336   : > { %v1283_v57 = vadd.f32 %v1282_v13, %v1220_v16  ;;  %v1242_v33 = vpop.f32.mrf.mxu0 }
 0x337   : > { %v1243_v10 = vadd.f32 %v1242_v33, %v1220_v16  ;;  %v1262_v41 = vpop.f32.mrf.mxu1  ;;  %v1566_v55 = vpop.eup %1565 }
 0x338   : > { %v1307_v58 = vmul.f32 0.5, %v1283_v57  ;;  %v1263_v14 = vadd.f32 %v1262_v41, %v1220_v16  ;;  %v1319_v37 = vmul.f32 1.442695, %v1566_v55  ;;  %v1340_v32 = vsel %vm509_vm0, %v1283_v57, %v1338_v45 }
 0x339   : > { %v1305_v17 = vmul.f32 0.5, %v1243_v10  ;;  %v1342_v19 = vrot.slane %v1340_v32, 6 }
 0x33a   : > { %v1306_v21 = vmul.f32 0.5, %v1263_v14  ;;  %1567 = vtanh.f32 %v1307_v58  ;;  %v1337_v25 = vrot.slane %v1263_v14, 4 }
 0x33b   : > { %1569 = vtanh.f32 %v1305_v17 }
 0x33c   : > { %1571 = vtanh.f32 %v1306_v21  ;;  %v1339_v49 = vsel %vm509_vm0, %v1243_v10, %v1337_v25 }
 0x33d   : > { %1573 = vpow2.f32 %v1319_v37  ;;  %v1341_v36 = vrot.slane %v1339_v49, 6 }
 0x340   : > { %v1568_v35 = vpop.eup %1567 }
 0x341   : > { %v1570_v43 = vpop.eup %1569  ;;  %v1317_v44 = vmul.f32 1.442695, %v1568_v35 }
 0x342   : > { %v1572_v38 = vpop.eup %1571  ;;  %v1313_v24 = vmul.f32 1.442695, %v1570_v43 }
 0x343   : > { %1575 = vpow2.f32 %v1317_v44  ;;  %v1315_v4 = vmul.f32 1.442695, %v1572_v38  ;;  %v1574_v3 = vpop.eup %1573 }
 0x344   : > { %v1326_v20 = vrot.slane %v1574_v3, 4 }
 0x345   : > { %1577 = vpow2.f32 %v1315_v4 }
 0x346   : > { %1579 = vpow2.f32 %v1313_v24 }
 0x349   : > { %v1576_v53 = vpop.eup %1575 }
 0x34a   : > { %v1328_v59 = vsel %vm509_vm0, %v1576_v53, %v1326_v20 }
 0x34b   : > { %v1578_v60 = vpop.eup %1577  ;;  %v1332_v39 = vmul.f32 %v1328_v59, %v1866_v0 }
 0x34c   : > { %v1325_v26 = vrot.slane %v1578_v60, 4  ;;  %v1580_v31 = vpop.eup %1579 }
 0x34d   : > { %v1346_v18 = vadd.f32 %v1342_v19, %v1332_v39 }
 0x34e   : > { %v1327_v30 = vsel %vm509_vm0, %v1580_v31, %v1325_v26 }
 0x34f   : > { %1348 = vst [vmem:[%s2279_s12 + $0x8] sm:$0xcc] %v1346_v18  ;;  %v1331_v0 = vmul.f32 %v1327_v30, %v1869_v1 }
 0x351   : > { %v1345_v5 = vadd.f32 %v1341_v36, %v1331_v0 }
 0x353   : > { %1347 = vst [vmem:[%s2279_s12] sm:$0xcc] %v1345_v5 }
 0x354   : > { %1668 = shalt.err (!%p1665_p9)
}
 0x355   : > { %1480 = dma.vmem_to_hbm [thread:$0]  (%p1821_p13), %s1364_s28, 256, %s1366_s25, %s1350_s19  }
 0x356 PF: > { %s1377_s17 = sand.u32 1, %s1699_s21   ;;  %p2575_p10 = scmp.ge.s32.totalorder %s1711_s24, 2 }
 0x357   : > { %s1378_s12 = scalar_lea.sflag [#allocation6], %s1377_s17 }
 0x358   : > { %p1491_p11 = pnand %p2575_p10, %p1826_p4 }
 0x35a   : > { %p1492_p0 = pneg %p1491_p11 }
 0x35c   : > { %1694 = dma.done.wait (%p1492_p0), %s1378_s12, 256  }
 0x35d   : > { %1696 = vsyncadd (%p1492_p0), %s1378_s12, 4294967040  ;;  %p20_p2 = scmp.ge.s32.totalorder %s1801_s11, 4   ;;  %s2576_s21 = smov %s1703_s22 }
 0x35e   : > { %s2577_s22 = smov %s1707_s23  ;;  %s2578_s23 = smov %s1813_s14 }
 0x35f   : > { %s2579_s24 = smov %s1801_s11  ;;  %22 = sbr.rel (!%p20_p2) target bundleno = 6 (0x6), region = 111 }
 0x364   :  { %1384 = vsyncpa [#allocation5], 1 }
 0x365   :  { %1386 = vsyncpa [#allocation5 + $0x1], 1 }
 0x366   :  { %1387 = vsyncpa [#allocation8], 1 }
 0x367   :  { %1388 = vsyncpa [#allocation6], 1 }
 0x368   :  { %1390 = vsyncpa [#allocation6 + $0x1], 1 }

</bundles_post_ra>
